<compile_context>
chip_gen: v6e
topology: v6e:2x2x1
jax: 0.10.0
libtpu: 0.0.40
codegen_flags: <defaults>
</compile_context>

<pallas_src>
import functools
import math
import sys

import numpy as np
import jax
import jax.numpy as jnp
from jax import lax
from jax.experimental import pallas as pl
from jax.experimental.pallas import tpu as pltpu

DEGREE = 4                       # module default; out_dim = degree**2 = 16
OUT_DIM = DEGREE ** 2

C0 = 0.28209479177387814
C1 = 0.4886025119029199
C2 = [1.0925484305920792, -1.0925484305920792, 0.31539156525252005,
      -1.0925484305920792, 0.5462742152960396]
C3 = [-0.5900435899266435, 2.890611442640554, -0.4570457994644658,
      0.3731763325901154, -0.4570457994644658, 1.445305721320277,
      -0.5900435899266435]
# C4 is only needed for degree == 5 (module default is degree=4).

# ------------------------------- tiling knobs --------------------------------
_RCHUNK = 128                    # lanes (output rows) per inner chunk -> 1024 pts
_UNROLL = 2                      # chunks per fori_loop iteration (partial unroll)
_GROUP = _RCHUNK * _UNROLL       # 256 rows per loop iteration -> 2048 points
_TR_MAX_DEFAULT = 4096           # rows / grid step -> 32768 points (~5 MiB VMEM)
_TM_MAX = 256                    # planar fallback tile
_SUB = 8


def _round_up(a, b):
    return ((a + b - 1) // b) * b


def _sh_components(x, y, z):
    """The 16 degree-4 SH basis values; x/y/z are same-shaped f32 arrays."""
    xx, yy, zz = x * x, y * y, z * z
    xy, yz, xz = x * y, y * z, x * z
    return [
        jnp.full_like(x, C0),                            # l = 0
        -C1 * y,                                         # l = 1
        C1 * z,
        -C1 * x,
        C2[0] * xy,                                      # l = 2
        C2[1] * yz,
        C2[2] * (2.0 * zz - xx - yy),
        C2[3] * xz,
        C2[4] * (xx - yy),
        C3[0] * y * (3.0 * xx - yy),                     # l = 3
        C3[1] * xy * z,
        C3[2] * y * (4.0 * zz - xx - yy),
        C3[3] * z * (2.0 * zz - 3.0 * xx - 3.0 * yy),
        C3[4] * x * (4.0 * zz - xx - yy),
        C3[5] * z * (xx - yy),
        C3[6] * x * (xx - 3.0 * yy),
    ]


def sh_reference(points):
    """Pure-JAX reference mirroring the PyTorch forward (degree=4)."""
    x = points[..., 0].astype(jnp.float32)
    y = points[..., 1].astype(jnp.float32)
    z = points[..., 2].astype(jnp.float32)
    return jnp.stack(_sh_components(x, y, z), axis=-1).astype(points.dtype)


# --------------------------- interleaved-output kernel -----------------------
@functools.lru_cache(maxsize=None)
def _perm_const():
    # perm[16*j + c, 8*c + j] = 1, so (perm @ W)[16j+c, r] = W[8c+j, r].
    p = np.zeros((128, 128), dtype=np.float32)
    for j in range(8):
        for c in range(OUT_DIM):
            p[16 * j + c, 8 * c + j] = 1.0
    return p


def _sh_interleaved_kernel(perm_ref, xyz_ref, o_ref, w_ref, *, use_mxu):
    # perm_ref: (128, 128) f32 one-hot permutation (only read when use_mxu)
    # xyz_ref : (3, 8, TR) f32; [c, j, r] = coord c of point 8*r + j
    # o_ref   : (TR, 128); row r, lane 16*j + c  ==  flat (N, 16) row-major
    # w_ref   : (128, 128) f32 VMEM scratch (only used when not use_mxu)
    tr = o_ref.shape[0]
    n_groups = tr // _GROUP

    if use_mxu:
        perm = perm_ref[...]                              # loop-invariant, vregs

    def group(gi, carry):
        base = gi * _GROUP
        for u in range(_UNROLL):                          # partial unroll
            s0 = pl.multiple_of(base + u * _RCHUNK, _RCHUNK)
            x = xyz_ref[0, :, pl.ds(s0, _RCHUNK)]         # (8, 128) f32
            y = xyz_ref[1, :, pl.ds(s0, _RCHUNK)]
            z = xyz_ref[2, :, pl.ds(s0, _RCHUNK)]
            comps = _sh_components(x, y, z)               # 16 x (8, 128) f32

            if use_mxu:
                # Register-level stack: W rows are 8*c + j (no memory traffic).
                w = jnp.concatenate(comps, axis=0)        # (128, 128)
                # Row reorder on the idle MXU: V[16j+c, r] = W[8c+j, r].
                v = jnp.dot(perm, w, preferred_element_type=jnp.float32)
            else:
                # Fallback shuffle: scratch stage + stride-8 sublane reads.
                for c in range(OUT_DIM):
                    w_ref[8 * c:8 * (c + 1), :] = comps[c]
                v = jnp.concatenate(
                    [w_ref[pl.ds(j, OUT_DIM, stride=8), :] for j in range(8)],
                    axis=0)

            # Single 128x128 XLU transpose; rows are now the final (N, 16)
            # row-major bytes -> dense unmasked 128-lane stores.
            o_ref[pl.ds(s0, _RCHUNK), :] = jnp.transpose(v).astype(o_ref.dtype)
        return carry

    lax.fori_loop(0, n_groups, group, 0)


def _tr_max():
    try:
        kind = jax.devices()[0].device_kind.lower()
        if "v7" in kind or "tpu7" in kind:
            return 8192            # 2 TCs + 3.2 TB/s HBM: halve step count
    except Exception:
        pass
    return _TR_MAX_DEFAULT


def _choose_tiling(nr):
    """Pick (tr, nr_pad): tr % _GROUP == 0, nr_pad % tr == 0, minimal padding,
    and >= 2 grid steps whenever there is enough work (both v7x TCs busy)."""
    tr_cap = _tr_max()
    nrg = max(_GROUP, _round_up(nr, _GROUP))
    steps = pl.cdiv(nrg, tr_cap)
    if steps == 1 and nrg >= 2 * _GROUP:
        steps = 2
    tr = _round_up(pl.cdiv(nrg, steps), _GROUP)
    return tr, steps * tr


def _encode_interleaved(flat, n, *, use_mxu):
    """flat: (n, 3) -> (n, 16); output produced directly in final layout."""
    dtype = flat.dtype
    nr = pl.cdiv(max(n, 1), 8)                    # output rows of 128 lanes
    tr, nr_pad = _choose_tiling(nr)
    n_pad = 8 * nr_pad

    # Force f32 into the kernel (sub-32-bit (3,8,TR) blocks would relayout).
    flat_p = jnp.pad(flat.astype(jnp.float32), ((0, n_pad - n), (0, 0)))
    # arranged[c, j, r] = coord c of point 8*r + j  (one XLA copy; pad fuses).
    # TODO(synk): if the producer can emit (3, 8, N/8) directly, this extra
    # ~24 B/point HBM pass disappears.
    arranged = flat_p.reshape(nr_pad, 8, 3).transpose(2, 1, 0)
    perm = jnp.asarray(_perm_const())

    grid = (nr_pad // tr,)
    kernel = functools.partial(_sh_interleaved_kernel, use_mxu=use_mxu)
    bytes_accessed = n_pad * (3 + OUT_DIM) * 4 + grid[0] * 128 * 128 * 4
    flops = n_pad * (40 + (4096 if use_mxu else 0))

    out = pl.pallas_call(
        kernel,
        out_shape=jax.ShapeDtypeStruct((nr_pad, 128), dtype),
        grid=grid,
        in_specs=[pl.BlockSpec((128, 128), lambda i: (0, 0)),
                  pl.BlockSpec((3, 8, tr), lambda i: (0, 0, i))],
        out_specs=pl.BlockSpec((tr, 128), lambda i: (i, 0)),
        scratch_shapes=[pltpu.VMEM((128, 128), jnp.float32)],
        compiler_params=pltpu.CompilerParams(
            dimension_semantics=("parallel",)),
        cost_estimate=pl.CostEstimate(
            flops=flops, transcendentals=0, bytes_accessed=bytes_accessed),
    )(perm, arranged)

    # (nr_pad, 128) row-major bytes == (n_pad, 16) row-major: reshape is free.
    return out.reshape(n_pad, OUT_DIM)[:n]


# -------------------- last-resort: planar (component-major) kernel -----------
def _sh_planar_kernel(xyz_ref, o_ref):
    # xyz_ref: (3, TM, 128) with [c, m, l] = coord c of point 128*m + l
    # o_ref:   (16, TM, 128) component-major planes
    tm = o_ref.shape[1]
    n_chunks = tm // _SUB

    def chunk(ci, carry):
        s0 = pl.multiple_of(ci * _SUB, _SUB)
        x = xyz_ref[0, pl.ds(s0, _SUB), :].astype(jnp.float32)
        y = xyz_ref[1, pl.ds(s0, _SUB), :].astype(jnp.float32)
        z = xyz_ref[2, pl.ds(s0, _SUB), :].astype(jnp.float32)
        comps = _sh_components(x, y, z)
        for c in range(OUT_DIM):
            o_ref[c, pl.ds(s0, _SUB), :] = comps[c].astype(o_ref.dtype)
        return carry

    lax.fori_loop(0, n_chunks, chunk, 0, unroll=True)


def _encode_planar(flat, n):
    dtype = flat.dtype
    m = max(1, pl.cdiv(n, 128))
    tm = min(_TM_MAX, _round_up(m, _SUB))
    m_pad = _round_up(m, tm)
    n_pad = 128 * m_pad

    flat_p = jnp.pad(flat, ((0, n_pad - n), (0, 0)))
    arranged = flat_p.T.reshape(3, m_pad, 128)

    out = pl.pallas_call(
        _sh_planar_kernel,
        out_shape=jax.ShapeDtypeStruct((OUT_DIM, m_pad, 128), dtype),
        grid=(m_pad // tm,),
        in_specs=[pl.BlockSpec((3, tm, 128), lambda i: (0, i, 0))],
        out_specs=pl.BlockSpec((OUT_DIM, tm, 128), lambda i: (0, i, 0)),
        compiler_params=pltpu.CompilerParams(
            dimension_semantics=("parallel",)),
    )(arranged)

    # Extra ~128 B/point XLA transpose pass: last-resort path only.
    return out.transpose(1, 2, 0).reshape(n_pad, OUT_DIM)[:n]


# ----------------------------- implementation pick ---------------------------
@functools.lru_cache(maxsize=None)
def _select_impl():
    """Pick the fastest path that lowers AND is numerically exact here:
    MXU-permutation interleave > strided-scratch interleave > planar."""
    probe = jnp.linspace(-1.0, 1.0, 3 * 96, dtype=jnp.float32).reshape(96, 3)
    want = sh_reference(probe)

    def ok(fn, name):
        try:
            got = fn(probe, 96)
            good = bool(jnp.allclose(got, want, rtol=1e-5, atol=1e-5))
            if not good:
                print(f"[sh_encode] probe '{name}' numerically inexact.",
                      file=sys.stderr)
            return good
        except Exception as e:                     # lowering / runtime failure
            print(f"[sh_encode] probe '{name}' failed: {e!r}", file=sys.stderr)
            return False

    if ok(functools.partial(_encode_interleaved, use_mxu=True), "mxu"):
        return "mxu"
    print("[sh_encode] WARNING: MXU-permutation path unavailable; falling back "
          "to strided-interleave kernel.", file=sys.stderr)
    if ok(functools.partial(_encode_interleaved, use_mxu=False), "scratch"):
        return "scratch"
    print("[sh_encode] WARNING: interleaved kernels unavailable; falling back "
          "to planar kernel + XLA transpose (slower).", file=sys.stderr)
    return "planar"


def sh_encode(points):
    """points: (..., 3) -> (..., 16), matching SHEncoder(degree=4).forward."""
    assert points.shape[-1] == 3
    lead = points.shape[:-1]
    n = int(math.prod(lead)) if lead else 1
    flat = points.reshape(n, 3)
    impl = _select_impl()
    if impl == "mxu":
        out = _encode_interleaved(flat, n, use_mxu=True)
    elif impl == "scratch":
        out = _encode_interleaved(flat, n, use_mxu=False)
    else:
        out = _encode_planar(flat, n)
    return out.reshape(*lead, OUT_DIM)


# ------------------------------------ test -----------------------------------
if __name__ == "__main__":
    key = jax.random.PRNGKey(0)
    # Small batch of 3-D direction vectors: (2, 128, 3)
    pts = jax.random.normal(key, (2, 128, 3), dtype=jnp.float32)
    pts = pts / jnp.linalg.norm(pts, axis=-1, keepdims=True)

    out = jax.block_until_ready(sh_encode(pts))
    ref = sh_reference(pts)

    assert out.shape == (2, 128, OUT_DIM), out.shape
    np.testing.assert_allclose(np.asarray(out), np.asarray(ref),
                               rtol=1e-5, atol=1e-5)
    print("KERNEL_OK")
</pallas_src>

<mosaic_0001>
module attributes {stable_mosaic.version = 11 : i64} {
  func.func @_sh_interleaved_kernel(%arg0: i32, %arg1: memref<128x128xf32, #tpu.memory_space<vmem>>, %arg2: memref<3x8x256xf32, #tpu.memory_space<vmem>>, %arg3: memref<256x128xf32, #tpu.memory_space<vmem>>, %arg4: memref<128x128xf32, #tpu.memory_space<vmem>>) attributes {dimension_semantics = [#tpu.dimension_semantics<parallel>], iteration_bounds = array<i64: 1>, scalar_prefetch = 0 : i64, scratch_operands = 1 : i64, tpu.core_type = #tpu.core_type<tc>, window_params = [{pipeline_mode = #tpu.pipeline_mode<synchronous>, transform_indices = @transform_0, window_bounds = array<i64: 128, 128>}, {transform_indices = @transform_1, window_bounds = array<i64: 3, 8, 256>}, {transform_indices = @transform_2, window_bounds = array<i64: 256, 128>}]} {
    %c0 = arith.constant 0 : index
    %c0_0 = arith.constant 0 : index
    %0 = vector.load %arg1[%c0, %c0_0] : memref<128x128xf32, #tpu.memory_space<vmem>>, vector<128x128xf32>
    %c0_i32 = arith.constant 0 : i32
    %c256_i32 = arith.constant 256 : i32
    %1 = arith.muli %c0_i32, %c256_i32 : i32
    %c0_i32_1 = arith.constant 0 : i32
    %2 = arith.addi %1, %c0_i32_1 : i32
    %3 = tpu.assume_multiple %2, 128 : i32
    %c0_2 = arith.constant 0 : index
    %c0_3 = arith.constant 0 : index
    %4 = arith.index_cast %3 : i32 to index
    %5 = vector.load %arg2[%c0_2, %c0_3, %4] : memref<3x8x256xf32, #tpu.memory_space<vmem>>, vector<1x8x128xf32>
    %6 = vector.shape_cast %5 : vector<1x8x128xf32> to vector<8x128xf32>
    %c1 = arith.constant 1 : index
    %c0_4 = arith.constant 0 : index
    %7 = arith.index_cast %3 : i32 to index
    %8 = vector.load %arg2[%c1, %c0_4, %7] : memref<3x8x256xf32, #tpu.memory_space<vmem>>, vector<1x8x128xf32>
    %9 = vector.shape_cast %8 : vector<1x8x128xf32> to vector<8x128xf32>
    %c2 = arith.constant 2 : index
    %c0_5 = arith.constant 0 : index
    %10 = arith.index_cast %3 : i32 to index
    %11 = vector.load %arg2[%c2, %c0_5, %10] : memref<3x8x256xf32, #tpu.memory_space<vmem>>, vector<1x8x128xf32>
    %12 = vector.shape_cast %11 : vector<1x8x128xf32> to vector<8x128xf32>
    %13 = arith.mulf %6, %6 : vector<8x128xf32>
    %14 = arith.mulf %9, %9 : vector<8x128xf32>
    %15 = arith.mulf %12, %12 : vector<8x128xf32>
    %16 = arith.mulf %6, %9 : vector<8x128xf32>
    %17 = arith.mulf %9, %12 : vector<8x128xf32>
    %18 = arith.mulf %6, %12 : vector<8x128xf32>
    %cst = arith.constant 0.282094806 : f32
    %19 = vector.broadcast %cst : f32 to vector<8x128xf32>
    %cst_6 = arith.constant -0.488602519 : f32
    %20 = vector.broadcast %cst_6 : f32 to vector<8x128xf32>
    %21 = arith.mulf %20, %9 : vector<8x128xf32>
    %cst_7 = arith.constant 0.488602519 : f32
    %22 = vector.broadcast %cst_7 : f32 to vector<8x128xf32>
    %23 = arith.mulf %22, %12 : vector<8x128xf32>
    %cst_8 = arith.constant -0.488602519 : f32
    %24 = vector.broadcast %cst_8 : f32 to vector<8x128xf32>
    %25 = arith.mulf %24, %6 : vector<8x128xf32>
    %cst_9 = arith.constant 1.09254849 : f32
    %26 = vector.broadcast %cst_9 : f32 to vector<8x128xf32>
    %27 = arith.mulf %26, %16 : vector<8x128xf32>
    %cst_10 = arith.constant -1.09254849 : f32
    %28 = vector.broadcast %cst_10 : f32 to vector<8x128xf32>
    %29 = arith.mulf %28, %17 : vector<8x128xf32>
    %cst_11 = arith.constant 2.000000e+00 : f32
    %30 = vector.broadcast %cst_11 : f32 to vector<8x128xf32>
    %31 = arith.mulf %30, %15 : vector<8x128xf32>
    %32 = arith.subf %31, %13 : vector<8x128xf32>
    %33 = arith.subf %32, %14 : vector<8x128xf32>
    %cst_12 = arith.constant 0.31539157 : f32
    %34 = vector.broadcast %cst_12 : f32 to vector<8x128xf32>
    %35 = arith.mulf %34, %33 : vector<8x128xf32>
    %cst_13 = arith.constant -1.09254849 : f32
    %36 = vector.broadcast %cst_13 : f32 to vector<8x128xf32>
    %37 = arith.mulf %36, %18 : vector<8x128xf32>
    %38 = arith.subf %13, %14 : vector<8x128xf32>
    %cst_14 = arith.constant 0.546274245 : f32
    %39 = vector.broadcast %cst_14 : f32 to vector<8x128xf32>
    %40 = arith.mulf %39, %38 : vector<8x128xf32>
    %cst_15 = arith.constant -0.590043604 : f32
    %41 = vector.broadcast %cst_15 : f32 to vector<8x128xf32>
    %42 = arith.mulf %41, %9 : vector<8x128xf32>
    %cst_16 = arith.constant 3.000000e+00 : f32
    %43 = vector.broadcast %cst_16 : f32 to vector<8x128xf32>
    %44 = arith.mulf %43, %13 : vector<8x128xf32>
    %45 = arith.subf %44, %14 : vector<8x128xf32>
    %46 = arith.mulf %42, %45 : vector<8x128xf32>
    %cst_17 = arith.constant 2.89061141 : f32
    %47 = vector.broadcast %cst_17 : f32 to vector<8x128xf32>
    %48 = arith.mulf %47, %16 : vector<8x128xf32>
    %49 = arith.mulf %48, %12 : vector<8x128xf32>
    %cst_18 = arith.constant -0.457045794 : f32
    %50 = vector.broadcast %cst_18 : f32 to vector<8x128xf32>
    %51 = arith.mulf %50, %9 : vector<8x128xf32>
    %cst_19 = arith.constant 4.000000e+00 : f32
    %52 = vector.broadcast %cst_19 : f32 to vector<8x128xf32>
    %53 = arith.mulf %52, %15 : vector<8x128xf32>
    %54 = arith.subf %53, %13 : vector<8x128xf32>
    %55 = arith.subf %54, %14 : vector<8x128xf32>
    %56 = arith.mulf %51, %55 : vector<8x128xf32>
    %cst_20 = arith.constant 0.373176336 : f32
    %57 = vector.broadcast %cst_20 : f32 to vector<8x128xf32>
    %58 = arith.mulf %57, %12 : vector<8x128xf32>
    %cst_21 = arith.constant 2.000000e+00 : f32
    %59 = vector.broadcast %cst_21 : f32 to vector<8x128xf32>
    %60 = arith.mulf %59, %15 : vector<8x128xf32>
    %cst_22 = arith.constant 3.000000e+00 : f32
    %61 = vector.broadcast %cst_22 : f32 to vector<8x128xf32>
    %62 = arith.mulf %61, %13 : vector<8x128xf32>
    %63 = arith.subf %60, %62 : vector<8x128xf32>
    %cst_23 = arith.constant 3.000000e+00 : f32
    %64 = vector.broadcast %cst_23 : f32 to vector<8x128xf32>
    %65 = arith.mulf %64, %14 : vector<8x128xf32>
    %66 = arith.subf %63, %65 : vector<8x128xf32>
    %67 = arith.mulf %58, %66 : vector<8x128xf32>
    %cst_24 = arith.constant -0.457045794 : f32
    %68 = vector.broadcast %cst_24 : f32 to vector<8x128xf32>
    %69 = arith.mulf %68, %6 : vector<8x128xf32>
    %cst_25 = arith.constant 4.000000e+00 : f32
    %70 = vector.broadcast %cst_25 : f32 to vector<8x128xf32>
    %71 = arith.mulf %70, %15 : vector<8x128xf32>
    %72 = arith.subf %71, %13 : vector<8x128xf32>
    %73 = arith.subf %72, %14 : vector<8x128xf32>
    %74 = arith.mulf %69, %73 : vector<8x128xf32>
    %cst_26 = arith.constant 1.44530571 : f32
    %75 = vector.broadcast %cst_26 : f32 to vector<8x128xf32>
    %76 = arith.mulf %75, %12 : vector<8x128xf32>
    %77 = arith.subf %13, %14 : vector<8x128xf32>
    %78 = arith.mulf %76, %77 : vector<8x128xf32>
    %cst_27 = arith.constant -0.590043604 : f32
    %79 = vector.broadcast %cst_27 : f32 to vector<8x128xf32>
    %80 = arith.mulf %79, %6 : vector<8x128xf32>
    %cst_28 = arith.constant 3.000000e+00 : f32
    %81 = vector.broadcast %cst_28 : f32 to vector<8x128xf32>
    %82 = arith.mulf %81, %14 : vector<8x128xf32>
    %83 = arith.subf %13, %82 : vector<8x128xf32>
    %84 = arith.mulf %80, %83 : vector<8x128xf32>
    %85 = tpu.concatenate %19, %21, %23, %25, %27, %29, %35, %37, %40, %46, %49, %56, %67, %74, %78, %84 in 0 : vector<8x128xf32>, vector<8x128xf32>, vector<8x128xf32>, vector<8x128xf32>, vector<8x128xf32>, vector<8x128xf32>, vector<8x128xf32>, vector<8x128xf32>, vector<8x128xf32>, vector<8x128xf32>, vector<8x128xf32>, vector<8x128xf32>, vector<8x128xf32>, vector<8x128xf32>, vector<8x128xf32>, vector<8x128xf32> -> vector<128x128xf32>
    %cst_29 = arith.constant dense<0.000000e+00> : vector<128x128xf32>
    %86 = tpu.matmul %0, %85, %cst_29 {dimension_numbers = #tpu.dot_dimension_numbers<[1], [0], [0], [1], [0, 0, 1, 1], [], []>} : vector<128x128xf32>, vector<128x128xf32>, vector<128x128xf32> -> vector<128x128xf32>
    %87 = tpu.transpose %86, [1, 0] : vector<128x128xf32> -> vector<128x128xf32>
    %88 = arith.index_cast %3 : i32 to index
    %c0_30 = arith.constant 0 : index
    %89 = vector.load %arg3[%88, %c0_30] : memref<256x128xf32, #tpu.memory_space<vmem>>, vector<128x128xf32>
    tpu.vector_store %arg3[%88, %c0_30], %87 {strides = array<i32>} : memref<256x128xf32, #tpu.memory_space<vmem>>, vector<128x128xf32>,
    %c128_i32 = arith.constant 128 : i32
    %90 = arith.addi %1, %c128_i32 : i32
    %91 = tpu.assume_multiple %90, 128 : i32
    %c0_31 = arith.constant 0 : index
    %c0_32 = arith.constant 0 : index
    %92 = arith.index_cast %91 : i32 to index
    %93 = vector.load %arg2[%c0_31, %c0_32, %92] : memref<3x8x256xf32, #tpu.memory_space<vmem>>, vector<1x8x128xf32>
    %94 = vector.shape_cast %93 : vector<1x8x128xf32> to vector<8x128xf32>
    %c1_33 = arith.constant 1 : index
    %c0_34 = arith.constant 0 : index
    %95 = arith.index_cast %91 : i32 to index
    %96 = vector.load %arg2[%c1_33, %c0_34, %95] : memref<3x8x256xf32, #tpu.memory_space<vmem>>, vector<1x8x128xf32>
    %97 = vector.shape_cast %96 : vector<1x8x128xf32> to vector<8x128xf32>
    %c2_35 = arith.constant 2 : index
    %c0_36 = arith.constant 0 : index
    %98 = arith.index_cast %91 : i32 to index
    %99 = vector.load %arg2[%c2_35, %c0_36, %98] : memref<3x8x256xf32, #tpu.memory_space<vmem>>, vector<1x8x128xf32>
    %100 = vector.shape_cast %99 : vector<1x8x128xf32> to vector<8x128xf32>
    %101 = arith.mulf %94, %94 : vector<8x128xf32>
    %102 = arith.mulf %97, %97 : vector<8x128xf32>
    %103 = arith.mulf %100, %100 : vector<8x128xf32>
    %104 = arith.mulf %94, %97 : vector<8x128xf32>
    %105 = arith.mulf %97, %100 : vector<8x128xf32>
    %106 = arith.mulf %94, %100 : vector<8x128xf32>
    %cst_37 = arith.constant 0.282094806 : f32
    %107 = vector.broadcast %cst_37 : f32 to vector<8x128xf32>
    %cst_38 = arith.constant -0.488602519 : f32
    %108 = vector.broadcast %cst_38 : f32 to vector<8x128xf32>
    %109 = arith.mulf %108, %97 : vector<8x128xf32>
    %cst_39 = arith.constant 0.488602519 : f32
    %110 = vector.broadcast %cst_39 : f32 to vector<8x128xf32>
    %111 = arith.mulf %110, %100 : vector<8x128xf32>
    %cst_40 = arith.constant -0.488602519 : f32
    %112 = vector.broadcast %cst_40 : f32 to vector<8x128xf32>
    %113 = arith.mulf %112, %94 : vector<8x128xf32>
    %cst_41 = arith.constant 1.09254849 : f32
    %114 = vector.broadcast %cst_41 : f32 to vector<8x128xf32>
    %115 = arith.mulf %114, %104 : vector<8x128xf32>
    %cst_42 = arith.constant -1.09254849 : f32
    %116 = vector.broadcast %cst_42 : f32 to vector<8x128xf32>
    %117 = arith.mulf %116, %105 : vector<8x128xf32>
    %cst_43 = arith.constant 2.000000e+00 : f32
    %118 = vector.broadcast %cst_43 : f32 to vector<8x128xf32>
    %119 = arith.mulf %118, %103 : vector<8x128xf32>
    %120 = arith.subf %119, %101 : vector<8x128xf32>
    %121 = arith.subf %120, %102 : vector<8x128xf32>
    %cst_44 = arith.constant 0.31539157 : f32
    %122 = vector.broadcast %cst_44 : f32 to vector<8x128xf32>
    %123 = arith.mulf %122, %121 : vector<8x128xf32>
    %cst_45 = arith.constant -1.09254849 : f32
    %124 = vector.broadcast %cst_45 : f32 to vector<8x128xf32>
    %125 = arith.mulf %124, %106 : vector<8x128xf32>
    %126 = arith.subf %101, %102 : vector<8x128xf32>
    %cst_46 = arith.constant 0.546274245 : f32
    %127 = vector.broadcast %cst_46 : f32 to vector<8x128xf32>
    %128 = arith.mulf %127, %126 : vector<8x128xf32>
    %cst_47 = arith.constant -0.590043604 : f32
    %129 = vector.broadcast %cst_47 : f32 to vector<8x128xf32>
    %130 = arith.mulf %129, %97 : vector<8x128xf32>
    %cst_48 = arith.constant 3.000000e+00 : f32
    %131 = vector.broadcast %cst_48 : f32 to vector<8x128xf32>
    %132 = arith.mulf %131, %101 : vector<8x128xf32>
    %133 = arith.subf %132, %102 : vector<8x128xf32>
    %134 = arith.mulf %130, %133 : vector<8x128xf32>
    %cst_49 = arith.constant 2.89061141 : f32
    %135 = vector.broadcast %cst_49 : f32 to vector<8x128xf32>
    %136 = arith.mulf %135, %104 : vector<8x128xf32>
    %137 = arith.mulf %136, %100 : vector<8x128xf32>
    %cst_50 = arith.constant -0.457045794 : f32
    %138 = vector.broadcast %cst_50 : f32 to vector<8x128xf32>
    %139 = arith.mulf %138, %97 : vector<8x128xf32>
    %cst_51 = arith.constant 4.000000e+00 : f32
    %140 = vector.broadcast %cst_51 : f32 to vector<8x128xf32>
    %141 = arith.mulf %140, %103 : vector<8x128xf32>
    %142 = arith.subf %141, %101 : vector<8x128xf32>
    %143 = arith.subf %142, %102 : vector<8x128xf32>
    %144 = arith.mulf %139, %143 : vector<8x128xf32>
    %cst_52 = arith.constant 0.373176336 : f32
    %145 = vector.broadcast %cst_52 : f32 to vector<8x128xf32>
    %146 = arith.mulf %145, %100 : vector<8x128xf32>
    %cst_53 = arith.constant 2.000000e+00 : f32
    %147 = vector.broadcast %cst_53 : f32 to vector<8x128xf32>
    %148 = arith.mulf %147, %103 : vector<8x128xf32>
    %cst_54 = arith.constant 3.000000e+00 : f32
    %149 = vector.broadcast %cst_54 : f32 to vector<8x128xf32>
    %150 = arith.mulf %149, %101 : vector<8x128xf32>
    %151 = arith.subf %148, %150 : vector<8x128xf32>
    %cst_55 = arith.constant 3.000000e+00 : f32
    %152 = vector.broadcast %cst_55 : f32 to vector<8x128xf32>
    %153 = arith.mulf %152, %102 : vector<8x128xf32>
    %154 = arith.subf %151, %153 : vector<8x128xf32>
    %155 = arith.mulf %146, %154 : vector<8x128xf32>
    %cst_56 = arith.constant -0.457045794 : f32
    %156 = vector.broadcast %cst_56 : f32 to vector<8x128xf32>
    %157 = arith.mulf %156, %94 : vector<8x128xf32>
    %cst_57 = arith.constant 4.000000e+00 : f32
    %158 = vector.broadcast %cst_57 : f32 to vector<8x128xf32>
    %159 = arith.mulf %158, %103 : vector<8x128xf32>
    %160 = arith.subf %159, %101 : vector<8x128xf32>
    %161 = arith.subf %160, %102 : vector<8x128xf32>
    %162 = arith.mulf %157, %161 : vector<8x128xf32>
    %cst_58 = arith.constant 1.44530571 : f32
    %163 = vector.broadcast %cst_58 : f32 to vector<8x128xf32>
    %164 = arith.mulf %163, %100 : vector<8x128xf32>
    %165 = arith.subf %101, %102 : vector<8x128xf32>
    %166 = arith.mulf %164, %165 : vector<8x128xf32>
    %cst_59 = arith.constant -0.590043604 : f32
    %167 = vector.broadcast %cst_59 : f32 to vector<8x128xf32>
    %168 = arith.mulf %167, %94 : vector<8x128xf32>
    %cst_60 = arith.constant 3.000000e+00 : f32
    %169 = vector.broadcast %cst_60 : f32 to vector<8x128xf32>
    %170 = arith.mulf %169, %102 : vector<8x128xf32>
    %171 = arith.subf %101, %170 : vector<8x128xf32>
    %172 = arith.mulf %168, %171 : vector<8x128xf32>
    %173 = tpu.concatenate %107, %109, %111, %113, %115, %117, %123, %125, %128, %134, %137, %144, %155, %162, %166, %172 in 0 : vector<8x128xf32>, vector<8x128xf32>, vector<8x128xf32>, vector<8x128xf32>, vector<8x128xf32>, vector<8x128xf32>, vector<8x128xf32>, vector<8x128xf32>, vector<8x128xf32>, vector<8x128xf32>, vector<8x128xf32>, vector<8x128xf32>, vector<8x128xf32>, vector<8x128xf32>, vector<8x128xf32>, vector<8x128xf32> -> vector<128x128xf32>
    %cst_61 = arith.constant dense<0.000000e+00> : vector<128x128xf32>
    %174 = tpu.matmul %0, %173, %cst_61 {dimension_numbers = #tpu.dot_dimension_numbers<[1], [0], [0], [1], [0, 0, 1, 1], [], []>} : vector<128x128xf32>, vector<128x128xf32>, vector<128x128xf32> -> vector<128x128xf32>
    %175 = tpu.transpose %174, [1, 0] : vector<128x128xf32> -> vector<128x128xf32>
    %176 = arith.index_cast %91 : i32 to index
    %c0_62 = arith.constant 0 : index
    %177 = vector.load %arg3[%176, %c0_62] : memref<256x128xf32, #tpu.memory_space<vmem>>, vector<128x128xf32>
    tpu.vector_store %arg3[%176, %c0_62], %175 {strides = array<i32>} : memref<256x128xf32, #tpu.memory_space<vmem>>, vector<128x128xf32>,
    %c1_i32 = arith.constant 1 : i32
    return
  }
  func.func @transform_0(%arg0: i32) -> (i32, i32) {
    %c0_i32 = arith.constant 0 : i32
    %c0_i32_0 = arith.constant 0 : i32
    %c0_i32_1 = arith.constant 0 : i32
    return %c0_i32, %c0_i32_0 : i32, i32
  }
  func.func @transform_1(%arg0: i32) -> (i32, i32, i32) {
    %c0_i32 = arith.constant 0 : i32
    %c0_i32_0 = arith.constant 0 : i32
    %c0_i32_1 = arith.constant 0 : i32
    return %c0_i32, %c0_i32_0, %arg0 : i32, i32, i32
  }
  func.func @transform_2(%arg0: i32) -> (i32, i32) {
    %c0_i32 = arith.constant 0 : i32
    %c0_i32_0 = arith.constant 0 : i32
    return %arg0, %c0_i32 : i32, i32
  }
}

module attributes {stable_mosaic.version = 11 : i64} {
  func.func @_sh_interleaved_kernel(%arg0: i32, %arg1: memref<128x128xf32, #tpu.memory_space<vmem>>, %arg2: memref<3x8x256xf32, #tpu.memory_space<vmem>>, %arg3: memref<256x128xf32, #tpu.memory_space<vmem>>, %arg4: memref<128x128xf32, #tpu.memory_space<vmem>>) attributes {dimension_semantics = [#tpu.dimension_semantics<parallel>], iteration_bounds = array<i64: 1>, scalar_prefetch = 0 : i64, scratch_operands = 1 : i64, tpu.core_type = #tpu.core_type<tc>, window_params = [{pipeline_mode = #tpu.pipeline_mode<synchronous>, transform_indices = @transform_0, window_bounds = array<i64: 128, 128>}, {transform_indices = @transform_1, window_bounds = array<i64: 3, 8, 256>}, {transform_indices = @transform_2, window_bounds = array<i64: 256, 128>}]} {
    %c0_i32 = arith.constant 0 : i32
    %c256_i32 = arith.constant 256 : i32
    %0 = arith.muli %c0_i32, %c256_i32 : i32
    %c0_i32_0 = arith.constant 0 : i32
    %1 = arith.addi %0, %c0_i32_0 : i32
    %2 = tpu.assume_multiple %1, 128 : i32
    %c0 = arith.constant 0 : index
    %c0_1 = arith.constant 0 : index
    %3 = arith.index_cast %2 : i32 to index
    %4 = vector.load %arg2[%c0, %c0_1, %3] : memref<3x8x256xf32, #tpu.memory_space<vmem>>, vector<1x8x128xf32>
    %5 = vector.shape_cast %4 : vector<1x8x128xf32> to vector<8x128xf32>
    %c1 = arith.constant 1 : index
    %c0_2 = arith.constant 0 : index
    %6 = arith.index_cast %2 : i32 to index
    %7 = vector.load %arg2[%c1, %c0_2, %6] : memref<3x8x256xf32, #tpu.memory_space<vmem>>, vector<1x8x128xf32>
    %8 = vector.shape_cast %7 : vector<1x8x128xf32> to vector<8x128xf32>
    %c2 = arith.constant 2 : index
    %c0_3 = arith.constant 0 : index
    %9 = arith.index_cast %2 : i32 to index
    %10 = vector.load %arg2[%c2, %c0_3, %9] : memref<3x8x256xf32, #tpu.memory_space<vmem>>, vector<1x8x128xf32>
    %11 = vector.shape_cast %10 : vector<1x8x128xf32> to vector<8x128xf32>
    %12 = arith.mulf %5, %5 : vector<8x128xf32>
    %13 = arith.mulf %8, %8 : vector<8x128xf32>
    %14 = arith.mulf %11, %11 : vector<8x128xf32>
    %15 = arith.mulf %5, %8 : vector<8x128xf32>
    %16 = arith.mulf %8, %11 : vector<8x128xf32>
    %17 = arith.mulf %5, %11 : vector<8x128xf32>
    %cst = arith.constant 0.282094806 : f32
    %18 = vector.broadcast %cst : f32 to vector<8x128xf32>
    %cst_4 = arith.constant -0.488602519 : f32
    %19 = vector.broadcast %cst_4 : f32 to vector<8x128xf32>
    %20 = arith.mulf %19, %8 : vector<8x128xf32>
    %cst_5 = arith.constant 0.488602519 : f32
    %21 = vector.broadcast %cst_5 : f32 to vector<8x128xf32>
    %22 = arith.mulf %21, %11 : vector<8x128xf32>
    %cst_6 = arith.constant -0.488602519 : f32
    %23 = vector.broadcast %cst_6 : f32 to vector<8x128xf32>
    %24 = arith.mulf %23, %5 : vector<8x128xf32>
    %cst_7 = arith.constant 1.09254849 : f32
    %25 = vector.broadcast %cst_7 : f32 to vector<8x128xf32>
    %26 = arith.mulf %25, %15 : vector<8x128xf32>
    %cst_8 = arith.constant -1.09254849 : f32
    %27 = vector.broadcast %cst_8 : f32 to vector<8x128xf32>
    %28 = arith.mulf %27, %16 : vector<8x128xf32>
    %cst_9 = arith.constant 2.000000e+00 : f32
    %29 = vector.broadcast %cst_9 : f32 to vector<8x128xf32>
    %30 = arith.mulf %29, %14 : vector<8x128xf32>
    %31 = arith.subf %30, %12 : vector<8x128xf32>
    %32 = arith.subf %31, %13 : vector<8x128xf32>
    %cst_10 = arith.constant 0.31539157 : f32
    %33 = vector.broadcast %cst_10 : f32 to vector<8x128xf32>
    %34 = arith.mulf %33, %32 : vector<8x128xf32>
    %cst_11 = arith.constant -1.09254849 : f32
    %35 = vector.broadcast %cst_11 : f32 to vector<8x128xf32>
    %36 = arith.mulf %35, %17 : vector<8x128xf32>
    %37 = arith.subf %12, %13 : vector<8x128xf32>
    %cst_12 = arith.constant 0.546274245 : f32
    %38 = vector.broadcast %cst_12 : f32 to vector<8x128xf32>
    %39 = arith.mulf %38, %37 : vector<8x128xf32>
    %cst_13 = arith.constant -0.590043604 : f32
    %40 = vector.broadcast %cst_13 : f32 to vector<8x128xf32>
    %41 = arith.mulf %40, %8 : vector<8x128xf32>
    %cst_14 = arith.constant 3.000000e+00 : f32
    %42 = vector.broadcast %cst_14 : f32 to vector<8x128xf32>
    %43 = arith.mulf %42, %12 : vector<8x128xf32>
    %44 = arith.subf %43, %13 : vector<8x128xf32>
    %45 = arith.mulf %41, %44 : vector<8x128xf32>
    %cst_15 = arith.constant 2.89061141 : f32
    %46 = vector.broadcast %cst_15 : f32 to vector<8x128xf32>
    %47 = arith.mulf %46, %15 : vector<8x128xf32>
    %48 = arith.mulf %47, %11 : vector<8x128xf32>
    %cst_16 = arith.constant -0.457045794 : f32
    %49 = vector.broadcast %cst_16 : f32 to vector<8x128xf32>
    %50 = arith.mulf %49, %8 : vector<8x128xf32>
    %cst_17 = arith.constant 4.000000e+00 : f32
    %51 = vector.broadcast %cst_17 : f32 to vector<8x128xf32>
    %52 = arith.mulf %51, %14 : vector<8x128xf32>
    %53 = arith.subf %52, %12 : vector<8x128xf32>
    %54 = arith.subf %53, %13 : vector<8x128xf32>
    %55 = arith.mulf %50, %54 : vector<8x128xf32>
    %cst_18 = arith.constant 0.373176336 : f32
    %56 = vector.broadcast %cst_18 : f32 to vector<8x128xf32>
    %57 = arith.mulf %56, %11 : vector<8x128xf32>
    %cst_19 = arith.constant 2.000000e+00 : f32
    %58 = vector.broadcast %cst_19 : f32 to vector<8x128xf32>
    %59 = arith.mulf %58, %14 : vector<8x128xf32>
    %cst_20 = arith.constant 3.000000e+00 : f32
    %60 = vector.broadcast %cst_20 : f32 to vector<8x128xf32>
    %61 = arith.mulf %60, %12 : vector<8x128xf32>
    %62 = arith.subf %59, %61 : vector<8x128xf32>
    %cst_21 = arith.constant 3.000000e+00 : f32
    %63 = vector.broadcast %cst_21 : f32 to vector<8x128xf32>
    %64 = arith.mulf %63, %13 : vector<8x128xf32>
    %65 = arith.subf %62, %64 : vector<8x128xf32>
    %66 = arith.mulf %57, %65 : vector<8x128xf32>
    %cst_22 = arith.constant -0.457045794 : f32
    %67 = vector.broadcast %cst_22 : f32 to vector<8x128xf32>
    %68 = arith.mulf %67, %5 : vector<8x128xf32>
    %cst_23 = arith.constant 4.000000e+00 : f32
    %69 = vector.broadcast %cst_23 : f32 to vector<8x128xf32>
    %70 = arith.mulf %69, %14 : vector<8x128xf32>
    %71 = arith.subf %70, %12 : vector<8x128xf32>
    %72 = arith.subf %71, %13 : vector<8x128xf32>
    %73 = arith.mulf %68, %72 : vector<8x128xf32>
    %cst_24 = arith.constant 1.44530571 : f32
    %74 = vector.broadcast %cst_24 : f32 to vector<8x128xf32>
    %75 = arith.mulf %74, %11 : vector<8x128xf32>
    %76 = arith.subf %12, %13 : vector<8x128xf32>
    %77 = arith.mulf %75, %76 : vector<8x128xf32>
    %cst_25 = arith.constant -0.590043604 : f32
    %78 = vector.broadcast %cst_25 : f32 to vector<8x128xf32>
    %79 = arith.mulf %78, %5 : vector<8x128xf32>
    %cst_26 = arith.constant 3.000000e+00 : f32
    %80 = vector.broadcast %cst_26 : f32 to vector<8x128xf32>
    %81 = arith.mulf %80, %13 : vector<8x128xf32>
    %82 = arith.subf %12, %81 : vector<8x128xf32>
    %83 = arith.mulf %79, %82 : vector<8x128xf32>
    %c0_27 = arith.constant 0 : index
    %c0_28 = arith.constant 0 : index
    %84 = vector.load %arg4[%c0_27, %c0_28] : memref<128x128xf32, #tpu.memory_space<vmem>>, vector<8x128xf32>
    tpu.vector_store %arg4[%c0_27, %c0_28], %18 {strides = array<i32>} : memref<128x128xf32, #tpu.memory_space<vmem>>, vector<8x128xf32>,
    %c8 = arith.constant 8 : index
    %c0_29 = arith.constant 0 : index
    %85 = vector.load %arg4[%c8, %c0_29] : memref<128x128xf32, #tpu.memory_space<vmem>>, vector<8x128xf32>
    tpu.vector_store %arg4[%c8, %c0_29], %20 {strides = array<i32>} : memref<128x128xf32, #tpu.memory_space<vmem>>, vector<8x128xf32>,
    %c16 = arith.constant 16 : index
    %c0_30 = arith.constant 0 : index
    %86 = vector.load %arg4[%c16, %c0_30] : memref<128x128xf32, #tpu.memory_space<vmem>>, vector<8x128xf32>
    tpu.vector_store %arg4[%c16, %c0_30], %22 {strides = array<i32>} : memref<128x128xf32, #tpu.memory_space<vmem>>, vector<8x128xf32>,
    %c24 = arith.constant 24 : index
    %c0_31 = arith.constant 0 : index
    %87 = vector.load %arg4[%c24, %c0_31] : memref<128x128xf32, #tpu.memory_space<vmem>>, vector<8x128xf32>
    tpu.vector_store %arg4[%c24, %c0_31], %24 {strides = array<i32>} : memref<128x128xf32, #tpu.memory_space<vmem>>, vector<8x128xf32>,
    %c32 = arith.constant 32 : index
    %c0_32 = arith.constant 0 : index
    %88 = vector.load %arg4[%c32, %c0_32] : memref<128x128xf32, #tpu.memory_space<vmem>>, vector<8x128xf32>
    tpu.vector_store %arg4[%c32, %c0_32], %26 {strides = array<i32>} : memref<128x128xf32, #tpu.memory_space<vmem>>, vector<8x128xf32>,
    %c40 = arith.constant 40 : index
    %c0_33 = arith.constant 0 : index
    %89 = vector.load %arg4[%c40, %c0_33] : memref<128x128xf32, #tpu.memory_space<vmem>>, vector<8x128xf32>
    tpu.vector_store %arg4[%c40, %c0_33], %28 {strides = array<i32>} : memref<128x128xf32, #tpu.memory_space<vmem>>, vector<8x128xf32>,
    %c48 = arith.constant 48 : index
    %c0_34 = arith.constant 0 : index
    %90 = vector.load %arg4[%c48, %c0_34] : memref<128x128xf32, #tpu.memory_space<vmem>>, vector<8x128xf32>
    tpu.vector_store %arg4[%c48, %c0_34], %34 {strides = array<i32>} : memref<128x128xf32, #tpu.memory_space<vmem>>, vector<8x128xf32>,
    %c56 = arith.constant 56 : index
    %c0_35 = arith.constant 0 : index
    %91 = vector.load %arg4[%c56, %c0_35] : memref<128x128xf32, #tpu.memory_space<vmem>>, vector<8x128xf32>
    tpu.vector_store %arg4[%c56, %c0_35], %36 {strides = array<i32>} : memref<128x128xf32, #tpu.memory_space<vmem>>, vector<8x128xf32>,
    %c64 = arith.constant 64 : index
    %c0_36 = arith.constant 0 : index
    %92 = vector.load %arg4[%c64, %c0_36] : memref<128x128xf32, #tpu.memory_space<vmem>>, vector<8x128xf32>
    tpu.vector_store %arg4[%c64, %c0_36], %39 {strides = array<i32>} : memref<128x128xf32, #tpu.memory_space<vmem>>, vector<8x128xf32>,
    %c72 = arith.constant 72 : index
    %c0_37 = arith.constant 0 : index
    %93 = vector.load %arg4[%c72, %c0_37] : memref<128x128xf32, #tpu.memory_space<vmem>>, vector<8x128xf32>
    tpu.vector_store %arg4[%c72, %c0_37], %45 {strides = array<i32>} : memref<128x128xf32, #tpu.memory_space<vmem>>, vector<8x128xf32>,
    %c80 = arith.constant 80 : index
    %c0_38 = arith.constant 0 : index
    %94 = vector.load %arg4[%c80, %c0_38] : memref<128x128xf32, #tpu.memory_space<vmem>>, vector<8x128xf32>
    tpu.vector_store %arg4[%c80, %c0_38], %48 {strides = array<i32>} : memref<128x128xf32, #tpu.memory_space<vmem>>, vector<8x128xf32>,
    %c88 = arith.constant 88 : index
    %c0_39 = arith.constant 0 : index
    %95 = vector.load %arg4[%c88, %c0_39] : memref<128x128xf32, #tpu.memory_space<vmem>>, vector<8x128xf32>
    tpu.vector_store %arg4[%c88, %c0_39], %55 {strides = array<i32>} : memref<128x128xf32, #tpu.memory_space<vmem>>, vector<8x128xf32>,
    %c96 = arith.constant 96 : index
    %c0_40 = arith.constant 0 : index
    %96 = vector.load %arg4[%c96, %c0_40] : memref<128x128xf32, #tpu.memory_space<vmem>>, vector<8x128xf32>
    tpu.vector_store %arg4[%c96, %c0_40], %66 {strides = array<i32>} : memref<128x128xf32, #tpu.memory_space<vmem>>, vector<8x128xf32>,
    %c104 = arith.constant 104 : index
    %c0_41 = arith.constant 0 : index
    %97 = vector.load %arg4[%c104, %c0_41] : memref<128x128xf32, #tpu.memory_space<vmem>>, vector<8x128xf32>
    tpu.vector_store %arg4[%c104, %c0_41], %73 {strides = array<i32>} : memref<128x128xf32, #tpu.memory_space<vmem>>, vector<8x128xf32>,
    %c112 = arith.constant 112 : index
    %c0_42 = arith.constant 0 : index
    %98 = vector.load %arg4[%c112, %c0_42] : memref<128x128xf32, #tpu.memory_space<vmem>>, vector<8x128xf32>
    tpu.vector_store %arg4[%c112, %c0_42], %77 {strides = array<i32>} : memref<128x128xf32, #tpu.memory_space<vmem>>, vector<8x128xf32>,
    %c120 = arith.constant 120 : index
    %c0_43 = arith.constant 0 : index
    %99 = vector.load %arg4[%c120, %c0_43] : memref<128x128xf32, #tpu.memory_space<vmem>>, vector<8x128xf32>
    tpu.vector_store %arg4[%c120, %c0_43], %83 {strides = array<i32>} : memref<128x128xf32, #tpu.memory_space<vmem>>, vector<8x128xf32>,
    %c0_44 = arith.constant 0 : index
    %c0_45 = arith.constant 0 : index
    %100 = tpu.strided_load %arg4[%c0_44, %c0_45] {strides = array<i32: 8, 1>} : memref<128x128xf32, #tpu.memory_space<vmem>>, vector<16x128xf32>
    %c1_46 = arith.constant 1 : index
    %c0_47 = arith.constant 0 : index
    %101 = tpu.strided_load %arg4[%c1_46, %c0_47] {strides = array<i32: 8, 1>} : memref<128x128xf32, #tpu.memory_space<vmem>>, vector<16x128xf32>
    %c2_48 = arith.constant 2 : index
    %c0_49 = arith.constant 0 : index
    %102 = tpu.strided_load %arg4[%c2_48, %c0_49] {strides = array<i32: 8, 1>} : memref<128x128xf32, #tpu.memory_space<vmem>>, vector<16x128xf32>
    %c3 = arith.constant 3 : index
    %c0_50 = arith.constant 0 : index
    %103 = tpu.strided_load %arg4[%c3, %c0_50] {strides = array<i32: 8, 1>} : memref<128x128xf32, #tpu.memory_space<vmem>>, vector<16x128xf32>
    %c4 = arith.constant 4 : index
    %c0_51 = arith.constant 0 : index
    %104 = tpu.strided_load %arg4[%c4, %c0_51] {strides = array<i32: 8, 1>} : memref<128x128xf32, #tpu.memory_space<vmem>>, vector<16x128xf32>
    %c5 = arith.constant 5 : index
    %c0_52 = arith.constant 0 : index
    %105 = tpu.strided_load %arg4[%c5, %c0_52] {strides = array<i32: 8, 1>} : memref<128x128xf32, #tpu.memory_space<vmem>>, vector<16x128xf32>
    %c6 = arith.constant 6 : index
    %c0_53 = arith.constant 0 : index
    %106 = tpu.strided_load %arg4[%c6, %c0_53] {strides = array<i32: 8, 1>} : memref<128x128xf32, #tpu.memory_space<vmem>>, vector<16x128xf32>
    %c7 = arith.constant 7 : index
    %c0_54 = arith.constant 0 : index
    %107 = tpu.strided_load %arg4[%c7, %c0_54] {strides = array<i32: 8, 1>} : memref<128x128xf32, #tpu.memory_space<vmem>>, vector<16x128xf32>
    %108 = tpu.concatenate %100, %101, %102, %103, %104, %105, %106, %107 in 0 : vector<16x128xf32>, vector<16x128xf32>, vector<16x128xf32>, vector<16x128xf32>, vector<16x128xf32>, vector<16x128xf32>, vector<16x128xf32>, vector<16x128xf32> -> vector<128x128xf32>
    %109 = tpu.transpose %108, [1, 0] : vector<128x128xf32> -> vector<128x128xf32>
    %110 = arith.index_cast %2 : i32 to index
    %c0_55 = arith.constant 0 : index
    %111 = vector.load %arg3[%110, %c0_55] : memref<256x128xf32, #tpu.memory_space<vmem>>, vector<128x128xf32>
    tpu.vector_store %arg3[%110, %c0_55], %109 {strides = array<i32>} : memref<256x128xf32, #tpu.memory_space<vmem>>, vector<128x128xf32>,
    %c128_i32 = arith.constant 128 : i32
    %112 = arith.addi %0, %c128_i32 : i32
    %113 = tpu.assume_multiple %112, 128 : i32
    %c0_56 = arith.constant 0 : index
    %c0_57 = arith.constant 0 : index
    %114 = arith.index_cast %113 : i32 to index
    %115 = vector.load %arg2[%c0_56, %c0_57, %114] : memref<3x8x256xf32, #tpu.memory_space<vmem>>, vector<1x8x128xf32>
    %116 = vector.shape_cast %115 : vector<1x8x128xf32> to vector<8x128xf32>
    %c1_58 = arith.constant 1 : index
    %c0_59 = arith.constant 0 : index
    %117 = arith.index_cast %113 : i32 to index
    %118 = vector.load %arg2[%c1_58, %c0_59, %117] : memref<3x8x256xf32, #tpu.memory_space<vmem>>, vector<1x8x128xf32>
    %119 = vector.shape_cast %118 : vector<1x8x128xf32> to vector<8x128xf32>
    %c2_60 = arith.constant 2 : index
    %c0_61 = arith.constant 0 : index
    %120 = arith.index_cast %113 : i32 to index
    %121 = vector.load %arg2[%c2_60, %c0_61, %120] : memref<3x8x256xf32, #tpu.memory_space<vmem>>, vector<1x8x128xf32>
    %122 = vector.shape_cast %121 : vector<1x8x128xf32> to vector<8x128xf32>
    %123 = arith.mulf %116, %116 : vector<8x128xf32>
    %124 = arith.mulf %119, %119 : vector<8x128xf32>
    %125 = arith.mulf %122, %122 : vector<8x128xf32>
    %126 = arith.mulf %116, %119 : vector<8x128xf32>
    %127 = arith.mulf %119, %122 : vector<8x128xf32>
    %128 = arith.mulf %116, %122 : vector<8x128xf32>
    %cst_62 = arith.constant 0.282094806 : f32
    %129 = vector.broadcast %cst_62 : f32 to vector<8x128xf32>
    %cst_63 = arith.constant -0.488602519 : f32
    %130 = vector.broadcast %cst_63 : f32 to vector<8x128xf32>
    %131 = arith.mulf %130, %119 : vector<8x128xf32>
    %cst_64 = arith.constant 0.488602519 : f32
    %132 = vector.broadcast %cst_64 : f32 to vector<8x128xf32>
    %133 = arith.mulf %132, %122 : vector<8x128xf32>
    %cst_65 = arith.constant -0.488602519 : f32
    %134 = vector.broadcast %cst_65 : f32 to vector<8x128xf32>
    %135 = arith.mulf %134, %116 : vector<8x128xf32>
    %cst_66 = arith.constant 1.09254849 : f32
    %136 = vector.broadcast %cst_66 : f32 to vector<8x128xf32>
    %137 = arith.mulf %136, %126 : vector<8x128xf32>
    %cst_67 = arith.constant -1.09254849 : f32
    %138 = vector.broadcast %cst_67 : f32 to vector<8x128xf32>
    %139 = arith.mulf %138, %127 : vector<8x128xf32>
    %cst_68 = arith.constant 2.000000e+00 : f32
    %140 = vector.broadcast %cst_68 : f32 to vector<8x128xf32>
    %141 = arith.mulf %140, %125 : vector<8x128xf32>
    %142 = arith.subf %141, %123 : vector<8x128xf32>
    %143 = arith.subf %142, %124 : vector<8x128xf32>
    %cst_69 = arith.constant 0.31539157 : f32
    %144 = vector.broadcast %cst_69 : f32 to vector<8x128xf32>
    %145 = arith.mulf %144, %143 : vector<8x128xf32>
    %cst_70 = arith.constant -1.09254849 : f32
    %146 = vector.broadcast %cst_70 : f32 to vector<8x128xf32>
    %147 = arith.mulf %146, %128 : vector<8x128xf32>
    %148 = arith.subf %123, %124 : vector<8x128xf32>
    %cst_71 = arith.constant 0.546274245 : f32
    %149 = vector.broadcast %cst_71 : f32 to vector<8x128xf32>
    %150 = arith.mulf %149, %148 : vector<8x128xf32>
    %cst_72 = arith.constant -0.590043604 : f32
    %151 = vector.broadcast %cst_72 : f32 to vector<8x128xf32>
    %152 = arith.mulf %151, %119 : vector<8x128xf32>
    %cst_73 = arith.constant 3.000000e+00 : f32
    %153 = vector.broadcast %cst_73 : f32 to vector<8x128xf32>
    %154 = arith.mulf %153, %123 : vector<8x128xf32>
    %155 = arith.subf %154, %124 : vector<8x128xf32>
    %156 = arith.mulf %152, %155 : vector<8x128xf32>
    %cst_74 = arith.constant 2.89061141 : f32
    %157 = vector.broadcast %cst_74 : f32 to vector<8x128xf32>
    %158 = arith.mulf %157, %126 : vector<8x128xf32>
    %159 = arith.mulf %158, %122 : vector<8x128xf32>
    %cst_75 = arith.constant -0.457045794 : f32
    %160 = vector.broadcast %cst_75 : f32 to vector<8x128xf32>
    %161 = arith.mulf %160, %119 : vector<8x128xf32>
    %cst_76 = arith.constant 4.000000e+00 : f32
    %162 = vector.broadcast %cst_76 : f32 to vector<8x128xf32>
    %163 = arith.mulf %162, %125 : vector<8x128xf32>
    %164 = arith.subf %163, %123 : vector<8x128xf32>
    %165 = arith.subf %164, %124 : vector<8x128xf32>
    %166 = arith.mulf %161, %165 : vector<8x128xf32>
    %cst_77 = arith.constant 0.373176336 : f32
    %167 = vector.broadcast %cst_77 : f32 to vector<8x128xf32>
    %168 = arith.mulf %167, %122 : vector<8x128xf32>
    %cst_78 = arith.constant 2.000000e+00 : f32
    %169 = vector.broadcast %cst_78 : f32 to vector<8x128xf32>
    %170 = arith.mulf %169, %125 : vector<8x128xf32>
    %cst_79 = arith.constant 3.000000e+00 : f32
    %171 = vector.broadcast %cst_79 : f32 to vector<8x128xf32>
    %172 = arith.mulf %171, %123 : vector<8x128xf32>
    %173 = arith.subf %170, %172 : vector<8x128xf32>
    %cst_80 = arith.constant 3.000000e+00 : f32
    %174 = vector.broadcast %cst_80 : f32 to vector<8x128xf32>
    %175 = arith.mulf %174, %124 : vector<8x128xf32>
    %176 = arith.subf %173, %175 : vector<8x128xf32>
    %177 = arith.mulf %168, %176 : vector<8x128xf32>
    %cst_81 = arith.constant -0.457045794 : f32
    %178 = vector.broadcast %cst_81 : f32 to vector<8x128xf32>
    %179 = arith.mulf %178, %116 : vector<8x128xf32>
    %cst_82 = arith.constant 4.000000e+00 : f32
    %180 = vector.broadcast %cst_82 : f32 to vector<8x128xf32>
    %181 = arith.mulf %180, %125 : vector<8x128xf32>
    %182 = arith.subf %181, %123 : vector<8x128xf32>
    %183 = arith.subf %182, %124 : vector<8x128xf32>
    %184 = arith.mulf %179, %183 : vector<8x128xf32>
    %cst_83 = arith.constant 1.44530571 : f32
    %185 = vector.broadcast %cst_83 : f32 to vector<8x128xf32>
    %186 = arith.mulf %185, %122 : vector<8x128xf32>
    %187 = arith.subf %123, %124 : vector<8x128xf32>
    %188 = arith.mulf %186, %187 : vector<8x128xf32>
    %cst_84 = arith.constant -0.590043604 : f32
    %189 = vector.broadcast %cst_84 : f32 to vector<8x128xf32>
    %190 = arith.mulf %189, %116 : vector<8x128xf32>
    %cst_85 = arith.constant 3.000000e+00 : f32
    %191 = vector.broadcast %cst_85 : f32 to vector<8x128xf32>
    %192 = arith.mulf %191, %124 : vector<8x128xf32>
    %193 = arith.subf %123, %192 : vector<8x128xf32>
    %194 = arith.mulf %190, %193 : vector<8x128xf32>
    %c0_86 = arith.constant 0 : index
    %c0_87 = arith.constant 0 : index
    %195 = vector.load %arg4[%c0_86, %c0_87] : memref<128x128xf32, #tpu.memory_space<vmem>>, vector<8x128xf32>
    tpu.vector_store %arg4[%c0_86, %c0_87], %129 {strides = array<i32>} : memref<128x128xf32, #tpu.memory_space<vmem>>, vector<8x128xf32>,
    %c8_88 = arith.constant 8 : index
    %c0_89 = arith.constant 0 : index
    %196 = vector.load %arg4[%c8_88, %c0_89] : memref<128x128xf32, #tpu.memory_space<vmem>>, vector<8x128xf32>
    tpu.vector_store %arg4[%c8_88, %c0_89], %131 {strides = array<i32>} : memref<128x128xf32, #tpu.memory_space<vmem>>, vector<8x128xf32>,
    %c16_90 = arith.constant 16 : index
    %c0_91 = arith.constant 0 : index
    %197 = vector.load %arg4[%c16_90, %c0_91] : memref<128x128xf32, #tpu.memory_space<vmem>>, vector<8x128xf32>
    tpu.vector_store %arg4[%c16_90, %c0_91], %133 {strides = array<i32>} : memref<128x128xf32, #tpu.memory_space<vmem>>, vector<8x128xf32>,
    %c24_92 = arith.constant 24 : index
    %c0_93 = arith.constant 0 : index
    %198 = vector.load %arg4[%c24_92, %c0_93] : memref<128x128xf32, #tpu.memory_space<vmem>>, vector<8x128xf32>
    tpu.vector_store %arg4[%c24_92, %c0_93], %135 {strides = array<i32>} : memref<128x128xf32, #tpu.memory_space<vmem>>, vector<8x128xf32>,
    %c32_94 = arith.constant 32 : index
    %c0_95 = arith.constant 0 : index
    %199 = vector.load %arg4[%c32_94, %c0_95] : memref<128x128xf32, #tpu.memory_space<vmem>>, vector<8x128xf32>
    tpu.vector_store %arg4[%c32_94, %c0_95], %137 {strides = array<i32>} : memref<128x128xf32, #tpu.memory_space<vmem>>, vector<8x128xf32>,
    %c40_96 = arith.constant 40 : index
    %c0_97 = arith.constant 0 : index
    %200 = vector.load %arg4[%c40_96, %c0_97] : memref<128x128xf32, #tpu.memory_space<vmem>>, vector<8x128xf32>
    tpu.vector_store %arg4[%c40_96, %c0_97], %139 {strides = array<i32>} : memref<128x128xf32, #tpu.memory_space<vmem>>, vector<8x128xf32>,
    %c48_98 = arith.constant 48 : index
    %c0_99 = arith.constant 0 : index
    %201 = vector.load %arg4[%c48_98, %c0_99] : memref<128x128xf32, #tpu.memory_space<vmem>>, vector<8x128xf32>
    tpu.vector_store %arg4[%c48_98, %c0_99], %145 {strides = array<i32>} : memref<128x128xf32, #tpu.memory_space<vmem>>, vector<8x128xf32>,
    %c56_100 = arith.constant 56 : index
    %c0_101 = arith.constant 0 : index
    %202 = vector.load %arg4[%c56_100, %c0_101] : memref<128x128xf32, #tpu.memory_space<vmem>>, vector<8x128xf32>
    tpu.vector_store %arg4[%c56_100, %c0_101], %147 {strides = array<i32>} : memref<128x128xf32, #tpu.memory_space<vmem>>, vector<8x128xf32>,
    %c64_102 = arith.constant 64 : index
    %c0_103 = arith.constant 0 : index
    %203 = vector.load %arg4[%c64_102, %c0_103] : memref<128x128xf32, #tpu.memory_space<vmem>>, vector<8x128xf32>
    tpu.vector_store %arg4[%c64_102, %c0_103], %150 {strides = array<i32>} : memref<128x128xf32, #tpu.memory_space<vmem>>, vector<8x128xf32>,
    %c72_104 = arith.constant 72 : index
    %c0_105 = arith.constant 0 : index
    %204 = vector.load %arg4[%c72_104, %c0_105] : memref<128x128xf32, #tpu.memory_space<vmem>>, vector<8x128xf32>
    tpu.vector_store %arg4[%c72_104, %c0_105], %156 {strides = array<i32>} : memref<128x128xf32, #tpu.memory_space<vmem>>, vector<8x128xf32>,
    %c80_106 = arith.constant 80 : index
    %c0_107 = arith.constant 0 : index
    %205 = vector.load %arg4[%c80_106, %c0_107] : memref<128x128xf32, #tpu.memory_space<vmem>>, vector<8x128xf32>
    tpu.vector_store %arg4[%c80_106, %c0_107], %159 {strides = array<i32>} : memref<128x128xf32, #tpu.memory_space<vmem>>, vector<8x128xf32>,
    %c88_108 = arith.constant 88 : index
    %c0_109 = arith.constant 0 : index
    %206 = vector.load %arg4[%c88_108, %c0_109] : memref<128x128xf32, #tpu.memory_space<vmem>>, vector<8x128xf32>
    tpu.vector_store %arg4[%c88_108, %c0_109], %166 {strides = array<i32>} : memref<128x128xf32, #tpu.memory_space<vmem>>, vector<8x128xf32>,
    %c96_110 = arith.constant 96 : index
    %c0_111 = arith.constant 0 : index
    %207 = vector.load %arg4[%c96_110, %c0_111] : memref<128x128xf32, #tpu.memory_space<vmem>>, vector<8x128xf32>
    tpu.vector_store %arg4[%c96_110, %c0_111], %177 {strides = array<i32>} : memref<128x128xf32, #tpu.memory_space<vmem>>, vector<8x128xf32>,
    %c104_112 = arith.constant 104 : index
    %c0_113 = arith.constant 0 : index
    %208 = vector.load %arg4[%c104_112, %c0_113] : memref<128x128xf32, #tpu.memory_space<vmem>>, vector<8x128xf32>
    tpu.vector_store %arg4[%c104_112, %c0_113], %184 {strides = array<i32>} : memref<128x128xf32, #tpu.memory_space<vmem>>, vector<8x128xf32>,
    %c112_114 = arith.constant 112 : index
    %c0_115 = arith.constant 0 : index
    %209 = vector.load %arg4[%c112_114, %c0_115] : memref<128x128xf32, #tpu.memory_space<vmem>>, vector<8x128xf32>
    tpu.vector_store %arg4[%c112_114, %c0_115], %188 {strides = array<i32>} : memref<128x128xf32, #tpu.memory_space<vmem>>, vector<8x128xf32>,
    %c120_116 = arith.constant 120 : index
    %c0_117 = arith.constant 0 : index
    %210 = vector.load %arg4[%c120_116, %c0_117] : memref<128x128xf32, #tpu.memory_space<vmem>>, vector<8x128xf32>
    tpu.vector_store %arg4[%c120_116, %c0_117], %194 {strides = array<i32>} : memref<128x128xf32, #tpu.memory_space<vmem>>, vector<8x128xf32>,
    %c0_118 = arith.constant 0 : index
    %c0_119 = arith.constant 0 : index
    %211 = tpu.strided_load %arg4[%c0_118, %c0_119] {strides = array<i32: 8, 1>} : memref<128x128xf32, #tpu.memory_space<vmem>>, vector<16x128xf32>
    %c1_120 = arith.constant 1 : index
    %c0_121 = arith.constant 0 : index
    %212 = tpu.strided_load %arg4[%c1_120, %c0_121] {strides = array<i32: 8, 1>} : memref<128x128xf32, #tpu.memory_space<vmem>>, vector<16x128xf32>
    %c2_122 = arith.constant 2 : index
    %c0_123 = arith.constant 0 : index
    %213 = tpu.strided_load %arg4[%c2_122, %c0_123] {strides = array<i32: 8, 1>} : memref<128x128xf32, #tpu.memory_space<vmem>>, vector<16x128xf32>
    %c3_124 = arith.constant 3 : index
    %c0_125 = arith.constant 0 : index
    %214 = tpu.strided_load %arg4[%c3_124, %c0_125] {strides = array<i32: 8, 1>} : memref<128x128xf32, #tpu.memory_space<vmem>>, vector<16x128xf32>
    %c4_126 = arith.constant 4 : index
    %c0_127 = arith.constant 0 : index
    %215 = tpu.strided_load %arg4[%c4_126, %c0_127] {strides = array<i32: 8, 1>} : memref<128x128xf32, #tpu.memory_space<vmem>>, vector<16x128xf32>
    %c5_128 = arith.constant 5 : index
    %c0_129 = arith.constant 0 : index
    %216 = tpu.strided_load %arg4[%c5_128, %c0_129] {strides = array<i32: 8, 1>} : memref<128x128xf32, #tpu.memory_space<vmem>>, vector<16x128xf32>
    %c6_130 = arith.constant 6 : index
    %c0_131 = arith.constant 0 : index
    %217 = tpu.strided_load %arg4[%c6_130, %c0_131] {strides = array<i32: 8, 1>} : memref<128x128xf32, #tpu.memory_space<vmem>>, vector<16x128xf32>
    %c7_132 = arith.constant 7 : index
    %c0_133 = arith.constant 0 : index
    %218 = tpu.strided_load %arg4[%c7_132, %c0_133] {strides = array<i32: 8, 1>} : memref<128x128xf32, #tpu.memory_space<vmem>>, vector<16x128xf32>
    %219 = tpu.concatenate %211, %212, %213, %214, %215, %216, %217, %218 in 0 : vector<16x128xf32>, vector<16x128xf32>, vector<16x128xf32>, vector<16x128xf32>, vector<16x128xf32>, vector<16x128xf32>, vector<16x128xf32>, vector<16x128xf32> -> vector<128x128xf32>
    %220 = tpu.transpose %219, [1, 0] : vector<128x128xf32> -> vector<128x128xf32>
    %221 = arith.index_cast %113 : i32 to index
    %c0_134 = arith.constant 0 : index
    %222 = vector.load %arg3[%221, %c0_134] : memref<256x128xf32, #tpu.memory_space<vmem>>, vector<128x128xf32>
    tpu.vector_store %arg3[%221, %c0_134], %220 {strides = array<i32>} : memref<256x128xf32, #tpu.memory_space<vmem>>, vector<128x128xf32>,
    %c1_i32 = arith.constant 1 : i32
    return
  }
  func.func @transform_0(%arg0: i32) -> (i32, i32) {
    %c0_i32 = arith.constant 0 : i32
    %c0_i32_0 = arith.constant 0 : i32
    %c0_i32_1 = arith.constant 0 : i32
    return %c0_i32, %c0_i32_0 : i32, i32
  }
  func.func @transform_1(%arg0: i32) -> (i32, i32, i32) {
    %c0_i32 = arith.constant 0 : i32
    %c0_i32_0 = arith.constant 0 : i32
    %c0_i32_1 = arith.constant 0 : i32
    return %c0_i32, %c0_i32_0, %arg0 : i32, i32, i32
  }
  func.func @transform_2(%arg0: i32) -> (i32, i32) {
    %c0_i32 = arith.constant 0 : i32
    %c0_i32_0 = arith.constant 0 : i32
    return %arg0, %c0_i32 : i32, i32
  }
}

module attributes {stable_mosaic.version = 11 : i64} {
  func.func @_sh_planar_kernel(%arg0: i32, %arg1: memref<3x8x128xf32, #tpu.memory_space<vmem>>, %arg2: memref<16x8x128xf32, #tpu.memory_space<vmem>>) attributes {dimension_semantics = [#tpu.dimension_semantics<parallel>], iteration_bounds = array<i64: 1>, scalar_prefetch = 0 : i64, scratch_operands = 0 : i64, tpu.core_type = #tpu.core_type<tc>, window_params = [{transform_indices = @transform_0, window_bounds = array<i64: 3, 8, 128>}, {transform_indices = @transform_1, window_bounds = array<i64: 16, 8, 128>}]} {
    %c0_i32 = arith.constant 0 : i32
    %c8_i32 = arith.constant 8 : i32
    %0 = arith.muli %c0_i32, %c8_i32 : i32
    %1 = tpu.assume_multiple %0, 8 : i32
    %c0 = arith.constant 0 : index
    %2 = arith.index_cast %1 : i32 to index
    %c0_0 = arith.constant 0 : index
    %3 = vector.load %arg1[%c0, %2, %c0_0] : memref<3x8x128xf32, #tpu.memory_space<vmem>>, vector<1x8x128xf32>
    %4 = vector.shape_cast %3 : vector<1x8x128xf32> to vector<8x128xf32>
    %c1 = arith.constant 1 : index
    %5 = arith.index_cast %1 : i32 to index
    %c0_1 = arith.constant 0 : index
    %6 = vector.load %arg1[%c1, %5, %c0_1] : memref<3x8x128xf32, #tpu.memory_space<vmem>>, vector<1x8x128xf32>
    %7 = vector.shape_cast %6 : vector<1x8x128xf32> to vector<8x128xf32>
    %c2 = arith.constant 2 : index
    %8 = arith.index_cast %1 : i32 to index
    %c0_2 = arith.constant 0 : index
    %9 = vector.load %arg1[%c2, %8, %c0_2] : memref<3x8x128xf32, #tpu.memory_space<vmem>>, vector<1x8x128xf32>
    %10 = vector.shape_cast %9 : vector<1x8x128xf32> to vector<8x128xf32>
    %11 = arith.mulf %4, %4 : vector<8x128xf32>
    %12 = arith.mulf %7, %7 : vector<8x128xf32>
    %13 = arith.mulf %10, %10 : vector<8x128xf32>
    %14 = arith.mulf %4, %7 : vector<8x128xf32>
    %15 = arith.mulf %7, %10 : vector<8x128xf32>
    %16 = arith.mulf %4, %10 : vector<8x128xf32>
    %cst = arith.constant 0.282094806 : f32
    %17 = vector.broadcast %cst : f32 to vector<8x128xf32>
    %cst_3 = arith.constant -0.488602519 : f32
    %18 = vector.broadcast %cst_3 : f32 to vector<8x128xf32>
    %19 = arith.mulf %18, %7 : vector<8x128xf32>
    %cst_4 = arith.constant 0.488602519 : f32
    %20 = vector.broadcast %cst_4 : f32 to vector<8x128xf32>
    %21 = arith.mulf %20, %10 : vector<8x128xf32>
    %cst_5 = arith.constant -0.488602519 : f32
    %22 = vector.broadcast %cst_5 : f32 to vector<8x128xf32>
    %23 = arith.mulf %22, %4 : vector<8x128xf32>
    %cst_6 = arith.constant 1.09254849 : f32
    %24 = vector.broadcast %cst_6 : f32 to vector<8x128xf32>
    %25 = arith.mulf %24, %14 : vector<8x128xf32>
    %cst_7 = arith.constant -1.09254849 : f32
    %26 = vector.broadcast %cst_7 : f32 to vector<8x128xf32>
    %27 = arith.mulf %26, %15 : vector<8x128xf32>
    %cst_8 = arith.constant 2.000000e+00 : f32
    %28 = vector.broadcast %cst_8 : f32 to vector<8x128xf32>
    %29 = arith.mulf %28, %13 : vector<8x128xf32>
    %30 = arith.subf %29, %11 : vector<8x128xf32>
    %31 = arith.subf %30, %12 : vector<8x128xf32>
    %cst_9 = arith.constant 0.31539157 : f32
    %32 = vector.broadcast %cst_9 : f32 to vector<8x128xf32>
    %33 = arith.mulf %32, %31 : vector<8x128xf32>
    %cst_10 = arith.constant -1.09254849 : f32
    %34 = vector.broadcast %cst_10 : f32 to vector<8x128xf32>
    %35 = arith.mulf %34, %16 : vector<8x128xf32>
    %36 = arith.subf %11, %12 : vector<8x128xf32>
    %cst_11 = arith.constant 0.546274245 : f32
    %37 = vector.broadcast %cst_11 : f32 to vector<8x128xf32>
    %38 = arith.mulf %37, %36 : vector<8x128xf32>
    %cst_12 = arith.constant -0.590043604 : f32
    %39 = vector.broadcast %cst_12 : f32 to vector<8x128xf32>
    %40 = arith.mulf %39, %7 : vector<8x128xf32>
    %cst_13 = arith.constant 3.000000e+00 : f32
    %41 = vector.broadcast %cst_13 : f32 to vector<8x128xf32>
    %42 = arith.mulf %41, %11 : vector<8x128xf32>
    %43 = arith.subf %42, %12 : vector<8x128xf32>
    %44 = arith.mulf %40, %43 : vector<8x128xf32>
    %cst_14 = arith.constant 2.89061141 : f32
    %45 = vector.broadcast %cst_14 : f32 to vector<8x128xf32>
    %46 = arith.mulf %45, %14 : vector<8x128xf32>
    %47 = arith.mulf %46, %10 : vector<8x128xf32>
    %cst_15 = arith.constant -0.457045794 : f32
    %48 = vector.broadcast %cst_15 : f32 to vector<8x128xf32>
    %49 = arith.mulf %48, %7 : vector<8x128xf32>
    %cst_16 = arith.constant 4.000000e+00 : f32
    %50 = vector.broadcast %cst_16 : f32 to vector<8x128xf32>
    %51 = arith.mulf %50, %13 : vector<8x128xf32>
    %52 = arith.subf %51, %11 : vector<8x128xf32>
    %53 = arith.subf %52, %12 : vector<8x128xf32>
    %54 = arith.mulf %49, %53 : vector<8x128xf32>
    %cst_17 = arith.constant 0.373176336 : f32
    %55 = vector.broadcast %cst_17 : f32 to vector<8x128xf32>
    %56 = arith.mulf %55, %10 : vector<8x128xf32>
    %cst_18 = arith.constant 2.000000e+00 : f32
    %57 = vector.broadcast %cst_18 : f32 to vector<8x128xf32>
    %58 = arith.mulf %57, %13 : vector<8x128xf32>
    %cst_19 = arith.constant 3.000000e+00 : f32
    %59 = vector.broadcast %cst_19 : f32 to vector<8x128xf32>
    %60 = arith.mulf %59, %11 : vector<8x128xf32>
    %61 = arith.subf %58, %60 : vector<8x128xf32>
    %cst_20 = arith.constant 3.000000e+00 : f32
    %62 = vector.broadcast %cst_20 : f32 to vector<8x128xf32>
    %63 = arith.mulf %62, %12 : vector<8x128xf32>
    %64 = arith.subf %61, %63 : vector<8x128xf32>
    %65 = arith.mulf %56, %64 : vector<8x128xf32>
    %cst_21 = arith.constant -0.457045794 : f32
    %66 = vector.broadcast %cst_21 : f32 to vector<8x128xf32>
    %67 = arith.mulf %66, %4 : vector<8x128xf32>
    %cst_22 = arith.constant 4.000000e+00 : f32
    %68 = vector.broadcast %cst_22 : f32 to vector<8x128xf32>
    %69 = arith.mulf %68, %13 : vector<8x128xf32>
    %70 = arith.subf %69, %11 : vector<8x128xf32>
    %71 = arith.subf %70, %12 : vector<8x128xf32>
    %72 = arith.mulf %67, %71 : vector<8x128xf32>
    %cst_23 = arith.constant 1.44530571 : f32
    %73 = vector.broadcast %cst_23 : f32 to vector<8x128xf32>
    %74 = arith.mulf %73, %10 : vector<8x128xf32>
    %75 = arith.subf %11, %12 : vector<8x128xf32>
    %76 = arith.mulf %74, %75 : vector<8x128xf32>
    %cst_24 = arith.constant -0.590043604 : f32
    %77 = vector.broadcast %cst_24 : f32 to vector<8x128xf32>
    %78 = arith.mulf %77, %4 : vector<8x128xf32>
    %cst_25 = arith.constant 3.000000e+00 : f32
    %79 = vector.broadcast %cst_25 : f32 to vector<8x128xf32>
    %80 = arith.mulf %79, %12 : vector<8x128xf32>
    %81 = arith.subf %11, %80 : vector<8x128xf32>
    %82 = arith.mulf %78, %81 : vector<8x128xf32>
    %c0_26 = arith.constant 0 : index
    %83 = arith.index_cast %1 : i32 to index
    %c0_27 = arith.constant 0 : index
    %84 = vector.load %arg2[%c0_26, %83, %c0_27] : memref<16x8x128xf32, #tpu.memory_space<vmem>>, vector<1x8x128xf32>
    %85 = vector.shape_cast %84 : vector<1x8x128xf32> to vector<8x128xf32>
    %86 = vector.shape_cast %17 : vector<8x128xf32> to vector<1x8x128xf32>
    tpu.vector_store %arg2[%c0_26, %83, %c0_27], %86 {strides = array<i32>} : memref<16x8x128xf32, #tpu.memory_space<vmem>>, vector<1x8x128xf32>,
    %c1_28 = arith.constant 1 : index
    %87 = arith.index_cast %1 : i32 to index
    %c0_29 = arith.constant 0 : index
    %88 = vector.load %arg2[%c1_28, %87, %c0_29] : memref<16x8x128xf32, #tpu.memory_space<vmem>>, vector<1x8x128xf32>
    %89 = vector.shape_cast %88 : vector<1x8x128xf32> to vector<8x128xf32>
    %90 = vector.shape_cast %19 : vector<8x128xf32> to vector<1x8x128xf32>
    tpu.vector_store %arg2[%c1_28, %87, %c0_29], %90 {strides = array<i32>} : memref<16x8x128xf32, #tpu.memory_space<vmem>>, vector<1x8x128xf32>,
    %c2_30 = arith.constant 2 : index
    %91 = arith.index_cast %1 : i32 to index
    %c0_31 = arith.constant 0 : index
    %92 = vector.load %arg2[%c2_30, %91, %c0_31] : memref<16x8x128xf32, #tpu.memory_space<vmem>>, vector<1x8x128xf32>
    %93 = vector.shape_cast %92 : vector<1x8x128xf32> to vector<8x128xf32>
    %94 = vector.shape_cast %21 : vector<8x128xf32> to vector<1x8x128xf32>
    tpu.vector_store %arg2[%c2_30, %91, %c0_31], %94 {strides = array<i32>} : memref<16x8x128xf32, #tpu.memory_space<vmem>>, vector<1x8x128xf32>,
    %c3 = arith.constant 3 : index
    %95 = arith.index_cast %1 : i32 to index
    %c0_32 = arith.constant 0 : index
    %96 = vector.load %arg2[%c3, %95, %c0_32] : memref<16x8x128xf32, #tpu.memory_space<vmem>>, vector<1x8x128xf32>
    %97 = vector.shape_cast %96 : vector<1x8x128xf32> to vector<8x128xf32>
    %98 = vector.shape_cast %23 : vector<8x128xf32> to vector<1x8x128xf32>
    tpu.vector_store %arg2[%c3, %95, %c0_32], %98 {strides = array<i32>} : memref<16x8x128xf32, #tpu.memory_space<vmem>>, vector<1x8x128xf32>,
    %c4 = arith.constant 4 : index
    %99 = arith.index_cast %1 : i32 to index
    %c0_33 = arith.constant 0 : index
    %100 = vector.load %arg2[%c4, %99, %c0_33] : memref<16x8x128xf32, #tpu.memory_space<vmem>>, vector<1x8x128xf32>
    %101 = vector.shape_cast %100 : vector<1x8x128xf32> to vector<8x128xf32>
    %102 = vector.shape_cast %25 : vector<8x128xf32> to vector<1x8x128xf32>
    tpu.vector_store %arg2[%c4, %99, %c0_33], %102 {strides = array<i32>} : memref<16x8x128xf32, #tpu.memory_space<vmem>>, vector<1x8x128xf32>,
    %c5 = arith.constant 5 : index
    %103 = arith.index_cast %1 : i32 to index
    %c0_34 = arith.constant 0 : index
    %104 = vector.load %arg2[%c5, %103, %c0_34] : memref<16x8x128xf32, #tpu.memory_space<vmem>>, vector<1x8x128xf32>
    %105 = vector.shape_cast %104 : vector<1x8x128xf32> to vector<8x128xf32>
    %106 = vector.shape_cast %27 : vector<8x128xf32> to vector<1x8x128xf32>
    tpu.vector_store %arg2[%c5, %103, %c0_34], %106 {strides = array<i32>} : memref<16x8x128xf32, #tpu.memory_space<vmem>>, vector<1x8x128xf32>,
    %c6 = arith.constant 6 : index
    %107 = arith.index_cast %1 : i32 to index
    %c0_35 = arith.constant 0 : index
    %108 = vector.load %arg2[%c6, %107, %c0_35] : memref<16x8x128xf32, #tpu.memory_space<vmem>>, vector<1x8x128xf32>
    %109 = vector.shape_cast %108 : vector<1x8x128xf32> to vector<8x128xf32>
    %110 = vector.shape_cast %33 : vector<8x128xf32> to vector<1x8x128xf32>
    tpu.vector_store %arg2[%c6, %107, %c0_35], %110 {strides = array<i32>} : memref<16x8x128xf32, #tpu.memory_space<vmem>>, vector<1x8x128xf32>,
    %c7 = arith.constant 7 : index
    %111 = arith.index_cast %1 : i32 to index
    %c0_36 = arith.constant 0 : index
    %112 = vector.load %arg2[%c7, %111, %c0_36] : memref<16x8x128xf32, #tpu.memory_space<vmem>>, vector<1x8x128xf32>
    %113 = vector.shape_cast %112 : vector<1x8x128xf32> to vector<8x128xf32>
    %114 = vector.shape_cast %35 : vector<8x128xf32> to vector<1x8x128xf32>
    tpu.vector_store %arg2[%c7, %111, %c0_36], %114 {strides = array<i32>} : memref<16x8x128xf32, #tpu.memory_space<vmem>>, vector<1x8x128xf32>,
    %c8 = arith.constant 8 : index
    %115 = arith.index_cast %1 : i32 to index
    %c0_37 = arith.constant 0 : index
    %116 = vector.load %arg2[%c8, %115, %c0_37] : memref<16x8x128xf32, #tpu.memory_space<vmem>>, vector<1x8x128xf32>
    %117 = vector.shape_cast %116 : vector<1x8x128xf32> to vector<8x128xf32>
    %118 = vector.shape_cast %38 : vector<8x128xf32> to vector<1x8x128xf32>
    tpu.vector_store %arg2[%c8, %115, %c0_37], %118 {strides = array<i32>} : memref<16x8x128xf32, #tpu.memory_space<vmem>>, vector<1x8x128xf32>,
    %c9 = arith.constant 9 : index
    %119 = arith.index_cast %1 : i32 to index
    %c0_38 = arith.constant 0 : index
    %120 = vector.load %arg2[%c9, %119, %c0_38] : memref<16x8x128xf32, #tpu.memory_space<vmem>>, vector<1x8x128xf32>
    %121 = vector.shape_cast %120 : vector<1x8x128xf32> to vector<8x128xf32>
    %122 = vector.shape_cast %44 : vector<8x128xf32> to vector<1x8x128xf32>
    tpu.vector_store %arg2[%c9, %119, %c0_38], %122 {strides = array<i32>} : memref<16x8x128xf32, #tpu.memory_space<vmem>>, vector<1x8x128xf32>,
    %c10 = arith.constant 10 : index
    %123 = arith.index_cast %1 : i32 to index
    %c0_39 = arith.constant 0 : index
    %124 = vector.load %arg2[%c10, %123, %c0_39] : memref<16x8x128xf32, #tpu.memory_space<vmem>>, vector<1x8x128xf32>
    %125 = vector.shape_cast %124 : vector<1x8x128xf32> to vector<8x128xf32>
    %126 = vector.shape_cast %47 : vector<8x128xf32> to vector<1x8x128xf32>
    tpu.vector_store %arg2[%c10, %123, %c0_39], %126 {strides = array<i32>} : memref<16x8x128xf32, #tpu.memory_space<vmem>>, vector<1x8x128xf32>,
    %c11 = arith.constant 11 : index
    %127 = arith.index_cast %1 : i32 to index
    %c0_40 = arith.constant 0 : index
    %128 = vector.load %arg2[%c11, %127, %c0_40] : memref<16x8x128xf32, #tpu.memory_space<vmem>>, vector<1x8x128xf32>
    %129 = vector.shape_cast %128 : vector<1x8x128xf32> to vector<8x128xf32>
    %130 = vector.shape_cast %54 : vector<8x128xf32> to vector<1x8x128xf32>
    tpu.vector_store %arg2[%c11, %127, %c0_40], %130 {strides = array<i32>} : memref<16x8x128xf32, #tpu.memory_space<vmem>>, vector<1x8x128xf32>,
    %c12 = arith.constant 12 : index
    %131 = arith.index_cast %1 : i32 to index
    %c0_41 = arith.constant 0 : index
    %132 = vector.load %arg2[%c12, %131, %c0_41] : memref<16x8x128xf32, #tpu.memory_space<vmem>>, vector<1x8x128xf32>
    %133 = vector.shape_cast %132 : vector<1x8x128xf32> to vector<8x128xf32>
    %134 = vector.shape_cast %65 : vector<8x128xf32> to vector<1x8x128xf32>
    tpu.vector_store %arg2[%c12, %131, %c0_41], %134 {strides = array<i32>} : memref<16x8x128xf32, #tpu.memory_space<vmem>>, vector<1x8x128xf32>,
    %c13 = arith.constant 13 : index
    %135 = arith.index_cast %1 : i32 to index
    %c0_42 = arith.constant 0 : index
    %136 = vector.load %arg2[%c13, %135, %c0_42] : memref<16x8x128xf32, #tpu.memory_space<vmem>>, vector<1x8x128xf32>
    %137 = vector.shape_cast %136 : vector<1x8x128xf32> to vector<8x128xf32>
    %138 = vector.shape_cast %72 : vector<8x128xf32> to vector<1x8x128xf32>
    tpu.vector_store %arg2[%c13, %135, %c0_42], %138 {strides = array<i32>} : memref<16x8x128xf32, #tpu.memory_space<vmem>>, vector<1x8x128xf32>,
    %c14 = arith.constant 14 : index
    %139 = arith.index_cast %1 : i32 to index
    %c0_43 = arith.constant 0 : index
    %140 = vector.load %arg2[%c14, %139, %c0_43] : memref<16x8x128xf32, #tpu.memory_space<vmem>>, vector<1x8x128xf32>
    %141 = vector.shape_cast %140 : vector<1x8x128xf32> to vector<8x128xf32>
    %142 = vector.shape_cast %76 : vector<8x128xf32> to vector<1x8x128xf32>
    tpu.vector_store %arg2[%c14, %139, %c0_43], %142 {strides = array<i32>} : memref<16x8x128xf32, #tpu.memory_space<vmem>>, vector<1x8x128xf32>,
    %c15 = arith.constant 15 : index
    %143 = arith.index_cast %1 : i32 to index
    %c0_44 = arith.constant 0 : index
    %144 = vector.load %arg2[%c15, %143, %c0_44] : memref<16x8x128xf32, #tpu.memory_space<vmem>>, vector<1x8x128xf32>
    %145 = vector.shape_cast %144 : vector<1x8x128xf32> to vector<8x128xf32>
    %146 = vector.shape_cast %82 : vector<8x128xf32> to vector<1x8x128xf32>
    tpu.vector_store %arg2[%c15, %143, %c0_44], %146 {strides = array<i32>} : memref<16x8x128xf32, #tpu.memory_space<vmem>>, vector<1x8x128xf32>,
    %c1_i32 = arith.constant 1 : i32
    return
  }
  func.func @transform_0(%arg0: i32) -> (i32, i32, i32) {
    %c0_i32 = arith.constant 0 : i32
    %c0_i32_0 = arith.constant 0 : i32
    %c0_i32_1 = arith.constant 0 : i32
    return %c0_i32, %arg0, %c0_i32_0 : i32, i32, i32
  }
  func.func @transform_1(%arg0: i32) -> (i32, i32, i32) {
    %c0_i32 = arith.constant 0 : i32
    %c0_i32_0 = arith.constant 0 : i32
    %c0_i32_1 = arith.constant 0 : i32
    return %c0_i32, %arg0, %c0_i32_0 : i32, i32, i32
  }
}

</mosaic_0001>

<bundles_post_ra>
// kernel: tpu_custom_call.1
= control target key start
LH: loop header
LB: loop body
LE: loop exit
PB: predicated region body
PF: predicated region fallthrough
CT: control target
= control target key end

     0   :  { %7 = vsyncpa [#allocation4], 0  ;;  %s954_s0 = inlined_call_operand.hbm [shape: f32[128,128], index: 0, kind: input, shape index: {}]   ;;  %s955_s1 = inlined_call_operand.hbm [shape: f32[3,8,256], index: 1, kind: input, shape index: {}]   ;;  %s956_s2 = inlined_call_operand.hbm [shape: f32[256,128], index: 2, kind: output, shape index: {}]  }
   0x1   :  { %8 = vsyncpa [#allocation7], 0 }
   0x2   :  { %9 = vsyncpa [#allocation5], 0  ;;  %s816_s9 = smov [#allocation3]  }
   0x3   :  { %s15_s10 = sshll.u32 %s816_s9, 4  ;;  %s16_s10 = int_to_ptr.vmem [resolvable:$true] %s15_s10 }
   0x4   :  { %s758_s11 = scalar_lea.vmem %s16_s10, 2048  ;;  %p763_p1 = scmp.lt.s32.totalorder %s16_s10, %s16_s10 }
   0x5   :  { %p759_p0 = scmp.ne.s32.totalorder %s16_s10, %s758_s11  ;;  %p764_p2 = scmp.lt.s32.totalorder %s758_s11, %s758_s11 }
   0x7   :  { %p765_p3 = por %p764_p2, %p763_p1 }
   0x9   :  { %p766_p4 = pnand %p765_p3, %p759_p0 }
   0xb   :  { %769 = shalt.err (!%p766_p4)
}
   0xc   :  { %s817_s12 = smov 128   ;;  %s818_s13 = smov 8  }
   0xd   :  { %21 = dma.hbm_to_vmem [thread:$0]  %s954_s0, 2048, %s16_s10, [#allocation4], %s817_s12, %s817_s12, %s818_s13  }
   0xe   :  { %s819_s16 = smov [#allocation6]  }
   0xf   :  { %s27_s17 = sshll.u32 %s819_s16, 4  ;;  %s28_s17 = int_to_ptr.vmem [resolvable:$true] %s27_s17 }
  0x10   :  { %s778_s18 = scalar_lea.vmem %s28_s17, 768  ;;  %p783_p6 = scmp.lt.s32.totalorder %s28_s17, %s28_s17 }
  0x11   :  { %p779_p5 = scmp.ne.s32.totalorder %s28_s17, %s778_s18  ;;  %p784_p7 = scmp.lt.s32.totalorder %s778_s18, %s778_s18 }
  0x13   :  { %p785_p8 = por %p784_p7, %p783_p6 }
  0x15   :  { %p786_p9 = pnand %p785_p8, %p779_p5 }
  0x17   :  { %789 = shalt.err (!%p786_p9)
}
  0x18   :  { %s820_s19 = smov 256   ;;  %s821_s20 = smov 16  }
  0x19   :  { %33 = dma.hbm_to_vmem [thread:$0]  %s955_s1, 768, %s28_s17, [#allocation7], %s820_s19, %s820_s19, %s821_s20  }
  0x1a   :  { %810 = dma.done.wait [#allocation4], 2048  }
  0x1b   :  { %811 = vsyncadd [#allocation4], 4294965248 }
  0x1c   :  { %812 = dma.done.wait [#allocation7], 768  }
  0x1d   :  { %813 = vsyncadd [#allocation7], 4294966528  ;;  %v848_v0 = vld [vmem:[#allocation6] sm:$0xff]  ;;  %v850_v1 = vld [vmem:[#allocation6 + $0x10] sm:$0xff]  ;;  %s823_s0 = smov [#allocation8]  }
  0x1e   :  { %v852_v2 = vld [vmem:[#allocation6 + $0x8] sm:$0xff]  ;;  %v856_v3 = vmul.f32 %v848_v0, %v848_v0  ;;  %v860_v4 = vmul.f32 %v850_v1, %v850_v1  ;;  %v103_v5 = vmul.f32 -0.5900436, %v848_v0  ;;  %v863_v6 = vld [vmem:[#allocation6 + $0x18] sm:$0xff]  ;;  %v869_v8 = vld [vmem:[#allocation6 + $0x20] sm:$0xff]  ;;  %v915_v47 = vmul.f32 %v850_v1, %v848_v0  ;;  %s549_s1 = sshll.u32 %s823_s0, 4  ;;  %s550_s1 = int_to_ptr.vmem [resolvable:$true] %s549_s1 }
  0x1f   :  { %v867_v7 = vmul.f32 %v852_v2, %v852_v2  ;;  %v871_v9 = vld [vmem:[#allocation6 + $0x28] sm:$0xff]  ;;  %v875_v10 = vmul.f32 %v863_v6, %v863_v6  ;;  %v347_v11 = vmul.f32 -0.5900436, %v852_v2  ;;  %v101_v12 = vmul.f32 1.4453057, %v869_v8  ;;  %v40_v18 = vld [vmem:[#allocation3] sm:$0xff]  ;;  %p795_p11 = scmp.lt.s32.totalorder %s550_s1, %s550_s1 }
  0x20   :  { %v345_v13 = vmul.f32 1.4453057, %v871_v9  ;;  %v96_v14 = vmul.f32 3.0, %v860_v4  ;;  %v883_v15 = vsub.f32 %v856_v3, %v860_v4  ;;  %v67_v16 = vmul.f32 %v869_v8, %v869_v8  ;;  %662 = vmatprep.mubr.f32.mxu0 %v40_v18  ;;  %718 = vmatprep.mubr.f32.mxu1 %v40_v18  ;;  %s790_s23 = scalar_lea.vmem %s550_s1, 4096 }
  0x21   :  { %v99_v17 = vmul.f32 -0.4570458, %v848_v0  ;;  %v340_v19 = vmul.f32 3.0, %v875_v10  ;;  %v891_v20 = vsub.f32 %v867_v7, %v875_v10  ;;  %v311_v21 = vmul.f32 %v871_v9, %v871_v9  ;;  %p791_p10 = scmp.ne.s32.totalorder %s550_s1, %s790_s23  ;;  %p796_p12 = scmp.lt.s32.totalorder %s790_s23, %s790_s23 }
  0x22   :  { %v343_v22 = vmul.f32 -0.4570458, %v852_v2  ;;  %v104_v23 = vsub.f32 %v856_v3, %v96_v14  ;;  %v102_v24 = vmul.f32 %v101_v12, %v883_v15  ;;  %v90_v25 = vmul.f32 4.0, %v67_v16 }
  0x23   :  { %v898_v26 = vmul.f32 2.0, %v67_v16  ;;  %v348_v27 = vsub.f32 %v867_v7, %v340_v19  ;;  %v346_v28 = vmul.f32 %v345_v13, %v891_v20  ;;  %v334_v29 = vmul.f32 4.0, %v311_v21  ;;  %p797_p13 = por %p796_p12, %p795_p11 }
  0x24   :  { %v84_v30 = vmul.f32 3.0, %v856_v3  ;;  %v105_v31 = vmul.f32 %v104_v23, %v103_v5  ;;  %v91_v32 = vsub.f32 %v90_v25, %v856_v3  ;;  %v94_v33 = vmul.f32 0.37317634, %v869_v8 }
  0x25   :  { %v320_v34 = vmul.f32 2.0, %v311_v21  ;;  %v349_v35 = vmul.f32 %v348_v27, %v347_v11  ;;  %v335_v36 = vsub.f32 %v334_v29, %v867_v7  ;;  %v328_v38 = vmul.f32 3.0, %v867_v7  ;;  %p798_p0 = pnand %p797_p13, %p791_p10 }
  0x26   :  { %v95_v37 = vsub.f32 %v898_v26, %v84_v30  ;;  %630 = vmatprep.subr.mxu0 %v105_v31  ;;  %v92_v39 = vsub.f32 %v91_v32, %v860_v4  ;;  %v338_v40 = vmul.f32 0.37317634, %v871_v9  ;;  %v89_v41 = vmul.f32 -0.4570458, %v850_v1  ;;  %v47_v32 = vld [vmem:[#allocation3 + $0x38] sm:$0xff] }
  0x27   :  { %686 = vmatprep.subr.mxu1 %v349_v35  ;;  %631 = vmatpush3.msra.mxu0 %v105_v31  ;;  %v336_v42 = vsub.f32 %v335_v36, %v875_v10  ;;  %v339_v44 = vsub.f32 %v320_v34, %v328_v38  ;;  %v333_v45 = vmul.f32 -0.4570458, %v863_v6  ;;  %v83_v51 = vmul.f32 -0.5900436, %v850_v1  ;;  %v46_v31 = vld [vmem:[#allocation3 + $0x30] sm:$0xff]  ;;  %v51_v36 = vld [vmem:[#allocation3 + $0x58] sm:$0xff] }
  0x28   :  { %v97_v43 = vsub.f32 %v95_v37, %v96_v14  ;;  %687 = vmatpush3.msra.mxu1 %v349_v35  ;;  %632 = vmatprep.subr.mxu0 %v102_v24  ;;  %v100_v46 = vmul.f32 %v99_v17, %v92_v39  ;;  %v93_v52 = vmul.f32 %v92_v39, %v89_v41  ;;  %v87_v53 = vmul.f32 2.8906114, %v915_v47  ;;  %v50_v35 = vld [vmem:[#allocation3 + $0x50] sm:$0xff]  ;;  %v52_v37 = vld [vmem:[#allocation3 + $0x60] sm:$0xff] }
  0x29   :  { %688 = vmatprep.subr.mxu1 %v346_v28  ;;  %633 = vmatpush3.msra.mxu0 %v102_v24  ;;  %v344_v48 = vmul.f32 %v343_v22, %v336_v42  ;;  %v341_v50 = vsub.f32 %v339_v44, %v340_v19  ;;  %v312_v54 = vmul.f32 %v863_v6, %v852_v2  ;;  %v327_v58 = vmul.f32 -0.5900436, %v863_v6  ;;  %v54_v39 = vld [vmem:[#allocation3 + $0x70] sm:$0xff] }
  0x2a   :  { %v98_v49 = vmul.f32 %v97_v43, %v94_v33  ;;  %689 = vmatpush3.msra.mxu1 %v346_v28  ;;  %634 = vmatprep.subr.mxu0 %v100_v46  ;;  %v85_v55 = vsub.f32 %v84_v30, %v860_v4  ;;  %v337_v57 = vmul.f32 %v336_v42, %v333_v45  ;;  %v326_v16 = vmul.f32 0.54627424, %v891_v20  ;;  %v45_v30 = vld [vmem:[#allocation3 + $0x28] sm:$0xff]  ;;  %v48_v33 = vld [vmem:[#allocation3 + $0x40] sm:$0xff] }
  0x2b   :  { %690 = vmatprep.subr.mxu1 %v344_v48  ;;  %635 = vmatpush3.msra.mxu0 %v100_v46  ;;  %v342_v56 = vmul.f32 %v341_v50, %v338_v40  ;;  %v329_v59 = vsub.f32 %v328_v38, %v875_v10  ;;  %v88_v60 = vmul.f32 %v87_v53, %v869_v8  ;;  %v331_v61 = vmul.f32 2.8906114, %v312_v54  ;;  %v53_v38 = vld [vmem:[#allocation3 + $0x68] sm:$0xff]  ;;  %v55_v40 = vld [vmem:[#allocation3 + $0x78] sm:$0xff] }
  0x2c   :  { %691 = vmatpush3.msra.mxu1 %v344_v48  ;;  %636 = vmatprep.subr.mxu0 %v98_v49  ;;  %v77_v62 = vsub.f32 %v898_v26, %v856_v3  ;;  %v321_v63 = vsub.f32 %v320_v34, %v867_v7  ;;  %v86_v11 = vmul.f32 %v85_v55, %v83_v51  ;;  %v82_v3 = vmul.f32 0.54627424, %v883_v15  ;;  %v49_v34 = vld [vmem:[#allocation3 + $0x48] sm:$0xff] }
  0x2d   :  { %692 = vmatprep.subr.mxu1 %v342_v56  ;;  %637 = vmatpush3.msra.mxu0 %v98_v49  ;;  %v332_v5 = vmul.f32 %v331_v61, %v871_v9  ;;  %v70_v12 = vmul.f32 %v869_v8, %v848_v0  ;;  %v330_v13 = vmul.f32 %v329_v59, %v327_v58  ;;  %v74_v23 = vmul.f32 1.0925485, %v915_v47 }
  0x2e   :  { %693 = vmatpush3.msra.mxu1 %v342_v56  ;;  %638 = vmatprep.subr.mxu0 %v93_v52  ;;  %v314_v14 = vmul.f32 %v871_v9, %v852_v2  ;;  %v78_v7 = vsub.f32 %v77_v62, %v860_v4  ;;  %v322_v17 = vsub.f32 %v321_v63, %v875_v10  ;;  %v318_v24 = vmul.f32 1.0925485, %v312_v54 }
  0x2f   :  { %694 = vmatprep.subr.mxu1 %v337_v57  ;;  %639 = vmatpush3.msra.mxu0 %v93_v52  ;;  %v80_v18 = vmul.f32 -1.0925485, %v70_v12  ;;  %v69_v19 = vmul.f32 %v869_v8, %v850_v1  ;;  %v313_v15 = vmul.f32 %v871_v9, %v863_v6  ;;  %v73_v25 = vmul.f32 -0.48860252, %v848_v0 }
  0x30   :  { %695 = vmatpush3.msra.mxu1 %v337_v57  ;;  %640 = vmatprep.subr.mxu0 %v88_v60  ;;  %v324_v21 = vmul.f32 -1.0925485, %v314_v14  ;;  %v79_v4 = vmul.f32 0.31539157, %v78_v7  ;;  %v323_v20 = vmul.f32 0.31539157, %v322_v17 }
  0x31   :  { %696 = vmatprep.subr.mxu1 %v332_v5  ;;  %641 = vmatpush3.msra.mxu0 %v88_v60  ;;  %v75_v10 = vmul.f32 -1.0925485, %v69_v19  ;;  %v319_v22 = vmul.f32 -1.0925485, %v313_v15  ;;  %v317_v26 = vmul.f32 -0.48860252, %v852_v2 }
  0x32   :  { %697 = vmatpush3.msra.mxu1 %v332_v5  ;;  %642 = vmatprep.subr.mxu0 %v86_v11  ;;  %v72_v27 = vmul.f32 0.48860252, %v869_v8  ;;  %v316_v28 = vmul.f32 0.48860252, %v871_v9  ;;  %v71_v29 = vmul.f32 -0.48860252, %v850_v1 }
  0x33   :  { %698 = vmatprep.subr.mxu1 %v330_v13  ;;  %643 = vmatpush3.msra.mxu0 %v86_v11  ;;  %v315_v0 = vmul.f32 -0.48860252, %v863_v6  ;;  %v41_v2 = vld [vmem:[#allocation3 + $0x8] sm:$0xff]  ;;  %v822_v8 = vmov 0.2820948   ;;  %v42_v9 = vld [vmem:[#allocation3 + $0x10] sm:$0xff] }
  0x34   :  { %699 = vmatpush3.msra.mxu1 %v330_v13  ;;  %644 = vmatprep.subr.mxu0 %v82_v3  ;;  %v43_v1 = vld [vmem:[#allocation3 + $0x18] sm:$0xff]  ;;  %v44_v6 = vld [vmem:[#allocation3 + $0x20] sm:$0xff] }
  0x35   :  { %700 = vmatprep.subr.mxu1 %v326_v16  ;;  %645 = vmatpush3.msra.mxu0 %v82_v3 }
  0x36   :  { %701 = vmatpush3.msra.mxu1 %v326_v16  ;;  %646 = vmatprep.subr.mxu0 %v80_v18 }
  0x37   :  { %702 = vmatprep.subr.mxu1 %v324_v21  ;;  %647 = vmatpush3.msra.mxu0 %v80_v18 }
  0x38   :  { %703 = vmatpush3.msra.mxu1 %v324_v21  ;;  %648 = vmatprep.subr.mxu0 %v79_v4 }
  0x39   :  { %704 = vmatprep.subr.mxu1 %v323_v20  ;;  %649 = vmatpush3.msra.mxu0 %v79_v4 }
  0x3a   :  { %705 = vmatpush3.msra.mxu1 %v323_v20  ;;  %650 = vmatprep.subr.mxu0 %v75_v10 }
  0x3b   :  { %706 = vmatprep.subr.mxu1 %v319_v22  ;;  %651 = vmatpush3.msra.mxu0 %v75_v10 }
  0x3c   :  { %707 = vmatpush3.msra.mxu1 %v319_v22  ;;  %652 = vmatprep.subr.mxu0 %v74_v23 }
  0x3d   :  { %708 = vmatprep.subr.mxu1 %v318_v24  ;;  %653 = vmatpush3.msra.mxu0 %v74_v23 }
  0x3e   :  { %709 = vmatpush3.msra.mxu1 %v318_v24  ;;  %654 = vmatprep.subr.mxu0 %v73_v25 }
  0x3f   :  { %710 = vmatprep.subr.mxu1 %v317_v26  ;;  %655 = vmatpush3.msra.mxu0 %v73_v25 }
  0x40   :  { %711 = vmatpush3.msra.mxu1 %v317_v26  ;;  %656 = vmatprep.subr.mxu0 %v72_v27 }
  0x41   :  { %712 = vmatprep.subr.mxu1 %v316_v28  ;;  %657 = vmatpush3.msra.mxu0 %v72_v27 }
  0x42   :  { %713 = vmatpush3.msra.mxu1 %v316_v28  ;;  %658 = vmatprep.subr.mxu0 %v71_v29 }
  0x43   :  { %714 = vmatprep.subr.mxu1 %v315_v0  ;;  %659 = vmatpush3.msra.mxu0 %v71_v29 }
  0x44   :  { %715 = vmatpush3.msra.mxu1 %v315_v0  ;;  %660 = vmatprep.subr.mxu0 %v822_v8 }
  0x45   :  { %716 = vmatprep.subr.mxu1 %v822_v8  ;;  %661 = vmatpush3.msra.mxu0 %v822_v8 }
  0x46   :  { %717 = vmatpush3.msra.mxu1 %v822_v8  ;;  %663 = vmatmul.mubr.f32.vlgmr.msra.gmra.mxu0 %v41_v2 }
  0x47   :  { %719 = vmatmul.mubr.f32.vlgmr.msra.gmra.mxu1 %v41_v2  ;;  %665 = vmatprep.mubr.f32.mxu0 %v42_v9 }
  0x48   :  { %721 = vmatprep.mubr.f32.mxu1 %v42_v9 }
  0x4a   :  { %666 = vmatmul.mubr.f32.gmra.mxu0 %v43_v1 }
  0x4b   :  { %722 = vmatmul.mubr.f32.gmra.mxu1 %v43_v1  ;;  %668 = vmatprep.mubr.f32.mxu0 %v44_v6 }
  0x4c   :  { %724 = vmatprep.mubr.f32.mxu1 %v44_v6 }
  0x4e   :  { %669 = vmatmul.mubr.f32.gmra.mxu0 %v45_v30 }
  0x4f   :  { %725 = vmatmul.mubr.f32.gmra.mxu1 %v45_v30  ;;  %671 = vmatprep.mubr.f32.mxu0 %v46_v31 }
  0x50   :  { %727 = vmatprep.mubr.f32.mxu1 %v46_v31 }
  0x52   :  { %672 = vmatmul.mubr.f32.gmra.mxu0 %v47_v32 }
  0x53   :  { %728 = vmatmul.mubr.f32.gmra.mxu1 %v47_v32  ;;  %674 = vmatprep.mubr.f32.mxu0 %v48_v33 }
  0x54   :  { %730 = vmatprep.mubr.f32.mxu1 %v48_v33 }
  0x56   :  { %675 = vmatmul.mubr.f32.gmra.mxu0 %v49_v34 }
  0x57   :  { %731 = vmatmul.mubr.f32.gmra.mxu1 %v49_v34  ;;  %677 = vmatprep.mubr.f32.mxu0 %v50_v35 }
  0x58   :  { %733 = vmatprep.mubr.f32.mxu1 %v50_v35 }
  0x5a   :  { %678 = vmatmul.mubr.f32.gmra.mxu0 %v51_v36 }
  0x5b   :  { %734 = vmatmul.mubr.f32.gmra.mxu1 %v51_v36  ;;  %680 = vmatprep.mubr.f32.mxu0 %v52_v37 }
  0x5c   :  { %736 = vmatprep.mubr.f32.mxu1 %v52_v37 }
  0x5e   :  { %681 = vmatmul.mubr.f32.gmra.mxu0 %v53_v38 }
  0x5f   :  { %737 = vmatmul.mubr.f32.gmra.mxu1 %v53_v38  ;;  %683 = vmatprep.mubr.f32.mxu0 %v54_v39 }
  0x60   :  { %739 = vmatprep.mubr.f32.mxu1 %v54_v39 }
  0x62   :  { %684 = vmatmul.mubr.f32.gmra.mxu0 %v55_v40 }
  0x63   :  { %740 = vmatmul.mubr.f32.gmra.mxu1 %v55_v40 }
 0x106   :  { %v664_v41 = vpop.f32.mrf.mxu0 }
 0x107   :  { %v720_v42 = vpop.f32.mrf.mxu1 }
 0x108   :  { %v172_v43 = vpop.f32.mrf.mxu0 }
 0x109   :  { %v416_v44 = vpop.f32.mrf.mxu1  ;;  %251 = vxpose.xlu0.b32.start [1/16] %v172_v43, 128 }
 0x10a   :  { %495 = vxpose.xlu1.b32.start [1/16] %v416_v44, 128  ;;  %v667_v45 = vpop.f32.mrf.mxu0 }
 0x10b   :  { %v723_v46 = vpop.f32.mrf.mxu1 }
 0x10c   :  { %v182_v47 = vpop.f32.mrf.mxu0 }
 0x10d   :  { %252 = vxpose.xlu0.b32.cont [2/16] %v664_v41, 128  ;;  %v426_v48 = vpop.f32.mrf.mxu1 }
 0x10e   :  { %496 = vxpose.xlu1.b32.cont [2/16] %v720_v42, 128  ;;  %v670_v49 = vpop.f32.mrf.mxu0 }
 0x10f   :  { %v726_v50 = vpop.f32.mrf.mxu1 }
 0x110   :  { %v192_v51 = vpop.f32.mrf.mxu0 }
 0x111   :  { %253 = vxpose.xlu0.b32.cont [3/16] %v182_v47, 128  ;;  %v436_v52 = vpop.f32.mrf.mxu1 }
 0x112   :  { %497 = vxpose.xlu1.b32.cont [3/16] %v426_v48, 128  ;;  %v673_v53 = vpop.f32.mrf.mxu0 }
 0x113   :  { %v729_v54 = vpop.f32.mrf.mxu1 }
 0x114   :  { %v202_v55 = vpop.f32.mrf.mxu0 }
 0x115   :  { %254 = vxpose.xlu0.b32.cont [4/16] %v667_v45, 128  ;;  %v446_v56 = vpop.f32.mrf.mxu1 }
 0x116   :  { %498 = vxpose.xlu1.b32.cont [4/16] %v723_v46, 128  ;;  %v676_v57 = vpop.f32.mrf.mxu0 }
 0x117   :  { %v732_v58 = vpop.f32.mrf.mxu1 }
 0x118   :  { %v212_v59 = vpop.f32.mrf.mxu0 }
 0x119   :  { %255 = vxpose.xlu0.b32.cont [5/16] %v192_v51, 128  ;;  %v456_v60 = vpop.f32.mrf.mxu1 }
 0x11a   :  { %499 = vxpose.xlu1.b32.cont [5/16] %v436_v52, 128  ;;  %v679_v61 = vpop.f32.mrf.mxu0 }
 0x11b   :  { %v735_v62 = vpop.f32.mrf.mxu1 }
 0x11c   :  { %v222_v63 = vpop.f32.mrf.mxu0 }
 0x11d   :  { %256 = vxpose.xlu0.b32.cont [6/16] %v670_v49, 128  ;;  %v466_v5 = vpop.f32.mrf.mxu1 }
 0x11e   :  { %500 = vxpose.xlu1.b32.cont [6/16] %v726_v50, 128  ;;  %v682_v11 = vpop.f32.mrf.mxu0 }
 0x11f   :  { %v738_v12 = vpop.f32.mrf.mxu1 }
 0x120   :  { %v232_v13 = vpop.f32.mrf.mxu0 }
 0x121   :  { %257 = vxpose.xlu0.b32.cont [7/16] %v202_v55, 128  ;;  %v476_v14 = vpop.f32.mrf.mxu1 }
 0x122   :  { %501 = vxpose.xlu1.b32.cont [7/16] %v446_v56, 128  ;;  %v685_v3 = vpop.f32.mrf.mxu0 }
 0x123   :  { %v741_v7 = vpop.f32.mrf.mxu1 }
 0x124   :  { %v242_v16 = vpop.f32.mrf.mxu0 }
 0x125   :  { %258 = vxpose.xlu0.b32.cont [8/16] %v673_v53, 128  ;;  %v486_v17 = vpop.f32.mrf.mxu1 }
 0x126   :  { %502 = vxpose.xlu1.b32.cont [8/16] %v729_v54, 128 }
 0x129   :  { %259 = vxpose.xlu0.b32.cont [9/16] %v212_v59, 128 }
 0x12a   :  { %503 = vxpose.xlu1.b32.cont [9/16] %v456_v60, 128 }
 0x12d   :  { %260 = vxpose.xlu0.b32.cont [10/16] %v676_v57, 128 }
 0x12e   :  { %504 = vxpose.xlu1.b32.cont [10/16] %v732_v58, 128 }
 0x131   :  { %261 = vxpose.xlu0.b32.cont [11/16] %v222_v63, 128 }
 0x132   :  { %505 = vxpose.xlu1.b32.cont [11/16] %v466_v5, 128 }
 0x135   :  { %262 = vxpose.xlu0.b32.cont [12/16] %v679_v61, 128 }
 0x136   :  { %506 = vxpose.xlu1.b32.cont [12/16] %v735_v62, 128 }
 0x139   :  { %263 = vxpose.xlu0.b32.cont [13/16] %v232_v13, 128 }
 0x13a   :  { %507 = vxpose.xlu1.b32.cont [13/16] %v476_v14, 128 }
 0x13d   :  { %264 = vxpose.xlu0.b32.cont [14/16] %v682_v11, 128 }
 0x13e   :  { %508 = vxpose.xlu1.b32.cont [14/16] %v738_v12, 128 }
 0x141   :  { %265 = vxpose.xlu0.b32.cont [15/16] %v242_v16, 128 }
 0x142   :  { %509 = vxpose.xlu1.b32.cont [15/16] %v486_v17, 128 }
 0x145   :  { %266 = vxpose.xlu0.b32.end [16/16] %v685_v3, 128 }
 0x146   :  { %510 = vxpose.xlu1.b32.end [16/16] %v741_v7, 128 }
 0x185   :  { %v267_v18 = vpop.trf.xlu0 }
 0x186   :  { %v511_v19 = vpop.trf.xlu1  ;;  %283 = vst [vmem:[#allocation8] sm:$0xff] %v267_v18 }
 0x187   :  { %528 = vst [vmem:[#allocation8 + $0x80] sm:$0xff] %v511_v19 }
 0x189   :  { %v268_v21 = vpop.trf.xlu0 }
 0x18a   :  { %v512_v15 = vpop.trf.xlu1  ;;  %284 = vst [vmem:[#allocation8 + $0x8] sm:$0xff] %v268_v21 }
 0x18b   :  { %529 = vst [vmem:[#allocation8 + $0x88] sm:$0xff] %v512_v15 }
 0x18d   :  { %v269_v4 = vpop.trf.xlu0 }
 0x18e   :  { %v513_v20 = vpop.trf.xlu1  ;;  %285 = vst [vmem:[#allocation8 + $0x10] sm:$0xff] %v269_v4 }
 0x18f   :  { %530 = vst [vmem:[#allocation8 + $0x90] sm:$0xff] %v513_v20 }
 0x191   :  { %v270_v10 = vpop.trf.xlu0 }
 0x192   :  { %v514_v22 = vpop.trf.xlu1  ;;  %286 = vst [vmem:[#allocation8 + $0x18] sm:$0xff] %v270_v10 }
 0x193   :  { %531 = vst [vmem:[#allocation8 + $0x98] sm:$0xff] %v514_v22 }
 0x195   :  { %v271_v23 = vpop.trf.xlu0 }
 0x196   :  { %v515_v24 = vpop.trf.xlu1  ;;  %287 = vst [vmem:[#allocation8 + $0x20] sm:$0xff] %v271_v23 }
 0x197   :  { %532 = vst [vmem:[#allocation8 + $0xa0] sm:$0xff] %v515_v24 }
 0x199   :  { %v272_v25 = vpop.trf.xlu0 }
 0x19a   :  { %v516_v26 = vpop.trf.xlu1  ;;  %288 = vst [vmem:[#allocation8 + $0x28] sm:$0xff] %v272_v25 }
 0x19b   :  { %533 = vst [vmem:[#allocation8 + $0xa8] sm:$0xff] %v516_v26 }
 0x19d   :  { %v273_v27 = vpop.trf.xlu0 }
 0x19e   :  { %v517_v28 = vpop.trf.xlu1  ;;  %289 = vst [vmem:[#allocation8 + $0x30] sm:$0xff] %v273_v27 }
 0x19f   :  { %534 = vst [vmem:[#allocation8 + $0xb0] sm:$0xff] %v517_v28 }
 0x1a1   :  { %v274_v29 = vpop.trf.xlu0 }
 0x1a2   :  { %v518_v0 = vpop.trf.xlu1  ;;  %290 = vst [vmem:[#allocation8 + $0x38] sm:$0xff] %v274_v29 }
 0x1a3   :  { %535 = vst [vmem:[#allocation8 + $0xb8] sm:$0xff] %v518_v0 }
 0x1a5   :  { %v275_v2 = vpop.trf.xlu0 }
 0x1a6   :  { %v519_v8 = vpop.trf.xlu1  ;;  %291 = vst [vmem:[#allocation8 + $0x40] sm:$0xff] %v275_v2 }
 0x1a7   :  { %536 = vst [vmem:[#allocation8 + $0xc0] sm:$0xff] %v519_v8 }
 0x1a9   :  { %v276_v9 = vpop.trf.xlu0 }
 0x1aa   :  { %v520_v1 = vpop.trf.xlu1  ;;  %292 = vst [vmem:[#allocation8 + $0x48] sm:$0xff] %v276_v9 }
 0x1ab   :  { %537 = vst [vmem:[#allocation8 + $0xc8] sm:$0xff] %v520_v1 }
 0x1ad   :  { %v277_v6 = vpop.trf.xlu0 }
 0x1ae   :  { %v521_v30 = vpop.trf.xlu1  ;;  %293 = vst [vmem:[#allocation8 + $0x50] sm:$0xff] %v277_v6 }
 0x1af   :  { %538 = vst [vmem:[#allocation8 + $0xd0] sm:$0xff] %v521_v30 }
 0x1b1   :  { %v278_v31 = vpop.trf.xlu0 }
 0x1b2   :  { %v522_v32 = vpop.trf.xlu1  ;;  %294 = vst [vmem:[#allocation8 + $0x58] sm:$0xff] %v278_v31 }
 0x1b3   :  { %539 = vst [vmem:[#allocation8 + $0xd8] sm:$0xff] %v522_v32 }
 0x1b5   :  { %v279_v33 = vpop.trf.xlu0 }
 0x1b6   :  { %v523_v34 = vpop.trf.xlu1  ;;  %295 = vst [vmem:[#allocation8 + $0x60] sm:$0xff] %v279_v33 }
 0x1b7   :  { %540 = vst [vmem:[#allocation8 + $0xe0] sm:$0xff] %v523_v34 }
 0x1b9   :  { %v280_v35 = vpop.trf.xlu0 }
 0x1ba   :  { %v524_v36 = vpop.trf.xlu1  ;;  %296 = vst [vmem:[#allocation8 + $0x68] sm:$0xff] %v280_v35 }
 0x1bb   :  { %541 = vst [vmem:[#allocation8 + $0xe8] sm:$0xff] %v524_v36 }
 0x1bd   :  { %v281_v37 = vpop.trf.xlu0 }
 0x1be   :  { %v525_v38 = vpop.trf.xlu1  ;;  %297 = vst [vmem:[#allocation8 + $0x70] sm:$0xff] %v281_v37 }
 0x1bf   :  { %542 = vst [vmem:[#allocation8 + $0xf0] sm:$0xff] %v525_v38 }
 0x1c1   :  { %v282_v39 = vpop.trf.xlu0 }
 0x1c2   :  { %v526_v40 = vpop.trf.xlu1  ;;  %298 = vst [vmem:[#allocation8 + $0x78] sm:$0xff] %v282_v39 }
 0x1c3   :  { %543 = vst [vmem:[#allocation8 + $0xf8] sm:$0xff] %v526_v40 }
 0x1c4   :  { %801 = shalt.err (!%p798_p0)
}
 0x1c5   :  { %555 = dma.vmem_to_hbm [thread:$0]  %s550_s1, 4096, %s956_s2, [#allocation5], %s817_s12, %s817_s12, %s818_s13  }
 0x1c6   :  { %814 = dma.done.wait [#allocation5], 4096  }
 0x1c7   :  { %815 = vsyncadd [#allocation5], 4294963200 }
 0x1c8   :  { %559 = vsyncpa [#allocation4], 1 }
 0x1c9   :  { %560 = vsyncpa [#allocation7], 1 }
 0x1ca   :  { %561 = vsyncpa [#allocation5], 1 }

// kernel: tpu_custom_call.1
= control target key start
LH: loop header
LB: loop body
LE: loop exit
PB: predicated region body
PF: predicated region fallthrough
CT: control target
= control target key end

     0   :  { %7 = vsyncpa [#allocation4], 0  ;;  %s660_s0 = inlined_call_operand.hbm [shape: f32[128,128], index: 0, kind: input, shape index: {}]   ;;  %s661_s1 = inlined_call_operand.hbm [shape: f32[3,8,256], index: 1, kind: input, shape index: {}]   ;;  %s662_s2 = inlined_call_operand.hbm [shape: f32[256,128], index: 2, kind: output, shape index: {}]  }
   0x1   :  { %8 = vsyncpa [#allocation7], 0 }
   0x2   :  { %9 = vsyncpa [#allocation5], 0  ;;  %s477_s9 = smov [#allocation3]  }
   0x3   :  { %s15_s10 = sshll.u32 %s477_s9, 4  ;;  %s16_s10 = int_to_ptr.vmem [resolvable:$true] %s15_s10 }
   0x4   :  { %s419_s11 = scalar_lea.vmem %s16_s10, 2048  ;;  %p424_p1 = scmp.lt.s32.totalorder %s16_s10, %s16_s10 }
   0x5   :  { %p420_p0 = scmp.ne.s32.totalorder %s16_s10, %s419_s11  ;;  %p425_p2 = scmp.lt.s32.totalorder %s419_s11, %s419_s11 }
   0x7   :  { %p426_p3 = por %p425_p2, %p424_p1 }
   0x9   :  { %p427_p4 = pnand %p426_p3, %p420_p0 }
   0xb   :  { %430 = shalt.err (!%p427_p4)
}
   0xc   :  { %s478_s12 = smov 128   ;;  %s479_s13 = smov 8  }
   0xd   :  { %21 = dma.hbm_to_vmem [thread:$0]  %s660_s0, 2048, %s16_s10, [#allocation4], %s478_s12, %s478_s12, %s479_s13  }
   0xe   :  { %s480_s16 = smov [#allocation6]  }
   0xf   :  { %s27_s17 = sshll.u32 %s480_s16, 4  ;;  %s28_s17 = int_to_ptr.vmem [resolvable:$true] %s27_s17 }
  0x10   :  { %s439_s18 = scalar_lea.vmem %s28_s17, 768  ;;  %p444_p6 = scmp.lt.s32.totalorder %s28_s17, %s28_s17 }
  0x11   :  { %p440_p5 = scmp.ne.s32.totalorder %s28_s17, %s439_s18  ;;  %p445_p7 = scmp.lt.s32.totalorder %s439_s18, %s439_s18 }
  0x13   :  { %p446_p8 = por %p445_p7, %p444_p6 }
  0x15   :  { %p447_p9 = pnand %p446_p8, %p440_p5 }
  0x17   :  { %450 = shalt.err (!%p447_p9)
}
  0x18   :  { %s481_s19 = smov 256   ;;  %s482_s20 = smov 16  }
  0x19   :  { %33 = dma.hbm_to_vmem [thread:$0]  %s661_s1, 768, %s28_s17, [#allocation7], %s481_s19, %s481_s19, %s482_s20  }
  0x1a   :  { %471 = dma.done.wait [#allocation4], 2048  }
  0x1b   :  { %472 = vsyncadd [#allocation4], 4294965248 }
  0x1c   :  { %473 = dma.done.wait [#allocation7], 768  }
  0x1d   :  { %474 = vsyncadd [#allocation7], 4294966528  ;;  %v483_v0 = vmov 0.2820948   ;;  %v510_v1 = vld [vmem:[#allocation6] sm:$0xff]  ;;  %v44_v2 = vld [vmem:[#allocation6 + $0x10] sm:$0xff] }
  0x1e   :  { %90 = vst [vmem:[#allocation2] sm:$0xff] %v483_v0  ;;  %v512_v3 = vld [vmem:[#allocation6 + $0x20] sm:$0xff]  ;;  %v516_v4 = vmul.f32 %v510_v1, %v510_v1  ;;  %v52_v6 = vmul.f32 %v44_v2, %v510_v1  ;;  %v521_v7 = vld [vmem:[#allocation6 + $0x28] sm:$0xff]  ;;  %v55_v10 = vmul.f32 -0.48860252, %v44_v2  ;;  %v50_v13 = vmul.f32 %v44_v2, %v44_v2  ;;  %v535_v21 = vld [vmem:[#allocation6 + $0x18] sm:$0xff] }
  0x1f   :  { %v51_v5 = vmul.f32 %v512_v3, %v512_v3  ;;  %v53_v8 = vmul.f32 %v512_v3, %v44_v2  ;;  %v54_v9 = vmul.f32 %v512_v3, %v510_v1  ;;  %v56_v11 = vmul.f32 0.48860252, %v512_v3  ;;  %v527_v12 = vld [vmem:[#allocation6 + $0x8] sm:$0xff]  ;;  %s484_s0 = smov [#allocation8]  }
  0x20   :  { %v57_v14 = vmul.f32 -0.48860252, %v510_v1  ;;  %v58_v15 = vmul.f32 1.0925485, %v52_v6  ;;  %91 = vst [vmem:[#allocation2 + $0x8] sm:$0xff] %v55_v10  ;;  %v532_v19 = vmul.f32 %v521_v7, %v521_v7  ;;  %v539_v22 = vmul.f32 %v527_v12, %v527_v12  ;;  %s386_s1 = sshll.u32 %s484_s0, 4  ;;  %s387_s1 = int_to_ptr.vmem [resolvable:$true] %s386_s1 }
  0x21   :  { %v60_v16 = vmul.f32 2.0, %v51_v5  ;;  %v59_v17 = vmul.f32 -1.0925485, %v53_v8  ;;  %v64_v18 = vmul.f32 -1.0925485, %v54_v9  ;;  %92 = vst [vmem:[#allocation2 + $0x10] sm:$0xff] %v56_v11  ;;  %v543_v23 = vmul.f32 %v535_v21, %v527_v12  ;;  %p456_p11 = scmp.lt.s32.totalorder %s387_s1, %s387_s1 }
  0x22   :  { %93 = vst [vmem:[#allocation2 + $0x18] sm:$0xff] %v57_v14  ;;  %94 = vst [vmem:[#allocation2 + $0x20] sm:$0xff] %v58_v15  ;;  %v65_v24 = vsub.f32 %v516_v4, %v50_v13  ;;  %v233_v26 = vmul.f32 -0.48860252, %v535_v21  ;;  %v234_v27 = vmul.f32 0.48860252, %v521_v7  ;;  %v553_v29 = vmul.f32 %v535_v21, %v535_v21 }
  0x23   :  { %v61_v20 = vsub.f32 %v60_v16, %v516_v4  ;;  %95 = vst [vmem:[#allocation2 + $0x28] sm:$0xff] %v59_v17  ;;  %97 = vst [vmem:[#allocation2 + $0x38] sm:$0xff] %v64_v18  ;;  %v549_v28 = vmul.f32 2.0, %v532_v19  ;;  %v235_v30 = vmul.f32 -0.48860252, %v527_v12  ;;  %v68_v35 = vmul.f32 3.0, %v516_v4 }
  0x24   :  { %v66_v31 = vmul.f32 0.54627424, %v65_v24  ;;  %v67_v32 = vmul.f32 -0.5900436, %v44_v2  ;;  %v71_v36 = vmul.f32 2.8906114, %v52_v6  ;;  %v231_v47 = vmul.f32 %v521_v7, %v535_v21 }
  0x25   :  { %v62_v25 = vsub.f32 %v61_v20, %v50_v13  ;;  %v239_v34 = vsub.f32 %v549_v28, %v539_v22  ;;  %v236_v37 = vmul.f32 1.0925485, %v543_v23  ;;  %v73_v38 = vmul.f32 -0.4570458, %v44_v2  ;;  %s451_s23 = scalar_lea.vmem %s387_s1, 4096 }
  0x26   :  { %v74_v39 = vmul.f32 4.0, %v51_v5  ;;  %v80_v40 = vmul.f32 3.0, %v50_v13  ;;  %98 = vst [vmem:[#allocation2 + $0x40] sm:$0xff] %v66_v31  ;;  %v69_v41 = vsub.f32 %v68_v35, %v50_v13  ;;  %v72_v42 = vmul.f32 %v71_v36, %v512_v3  ;;  %p452_p10 = scmp.ne.s32.totalorder %s387_s1, %s451_s23  ;;  %p457_p12 = scmp.lt.s32.totalorder %s451_s23, %s451_s23 }
  0x27   :  { %v63_v33 = vmul.f32 0.31539157, %v62_v25  ;;  %v78_v43 = vmul.f32 0.37317634, %v512_v3  ;;  %v79_v44 = vsub.f32 %v60_v16, %v68_v35  ;;  %v232_v51 = vmul.f32 %v521_v7, %v527_v12 }
  0x28   :  { %v75_v48 = vsub.f32 %v74_v39, %v516_v4  ;;  %v240_v52 = vsub.f32 %v239_v34, %v553_v29  ;;  %v70_v53 = vmul.f32 %v69_v41, %v67_v32  ;;  %100 = vst [vmem:[#allocation2 + $0x50] sm:$0xff] %v72_v42  ;;  %v88_v61 = vsub.f32 %v516_v4, %v80_v40  ;;  %p458_p13 = por %p457_p12, %p456_p11 }
  0x29   :  { %96 = vst [vmem:[#allocation2 + $0x30] sm:$0xff] %v63_v33  ;;  %v106_v45 = vld [vmem:[#allocation2] ss:$8 sm:$0xf]  ;;  %v81_v54 = vsub.f32 %v79_v44, %v80_v40  ;;  %v237_v62 = vmul.f32 -1.0925485, %v231_v47  ;;  %v243_v20 = vsub.f32 %v539_v22, %v553_v29 }
  0x2a   :  { %v562_v46 = vld [vmem:[#allocation2 + $0x1] ss:$8 sm:$0xf]  ;;  %v567_v49 = vld [vmem:[#allocation2 + $0x2] ss:$8 sm:$0xf]  ;;  %v76_v57 = vsub.f32 %v75_v48, %v50_v13  ;;  %p459_p0 = pnand %p458_p13, %p452_p10 }
  0x2b   :  { %v569_v50 = vld [vmem:[#allocation2 + $0x3] ss:$8 sm:$0xf]  ;;  %v574_v55 = vld [vmem:[#allocation2 + $0x4] ss:$8 sm:$0xf]  ;;  %v82_v60 = vmul.f32 %v81_v54, %v78_v43 }
  0x2c   :  { %v576_v56 = vld [vmem:[#allocation2 + $0x5] ss:$8 sm:$0xf]  ;;  %v578_v58 = vld [vmem:[#allocation2 + $0x6] ss:$8 sm:$0xf]  ;;  %v77_v63 = vmul.f32 %v76_v57, %v73_v38 }
  0x2d   :  { %v580_v59 = vld [vmem:[#allocation2 + $0x7] ss:$8 sm:$0xf]  ;;  %99 = vst [vmem:[#allocation2 + $0x48] sm:$0xff] %v70_v53  ;;  %v83_v2 = vmul.f32 -0.4570458, %v510_v1 }
  0x2e   :  { %268 = vst [vmem:[#allocation2] sm:$0xff] %v483_v0  ;;  %269 = vst [vmem:[#allocation2 + $0x8] sm:$0xff] %v233_v26  ;;  %v85_v5 = vmul.f32 1.4453057, %v512_v3  ;;  %v241_v6 = vmul.f32 0.31539157, %v240_v52 }
  0x2f   :  { %270 = vst [vmem:[#allocation2 + $0x10] sm:$0xff] %v234_v27  ;;  %271 = vst [vmem:[#allocation2 + $0x18] sm:$0xff] %v235_v30  ;;  %v242_v8 = vmul.f32 -1.0925485, %v232_v51  ;;  %v87_v9 = vmul.f32 -0.5900436, %v510_v1  ;;  %v84_v4 = vmul.f32 %v83_v2, %v76_v57 }
  0x30   :  { %102 = vst [vmem:[#allocation2 + $0x60] sm:$0xff] %v82_v60  ;;  %v107_v10 = vld [vmem:[#allocation2] ss:$8 sm:$0xf0]  ;;  %v86_v13 = vmul.f32 %v85_v5, %v65_v24  ;;  %101 = vst [vmem:[#allocation2 + $0x58] sm:$0xff] %v77_v63  ;;  %v246_v24 = vmul.f32 3.0, %v539_v22 }
  0x31   :  { %v587_v11 = vld [vmem:[#allocation2 + $0x1] ss:$8 sm:$0xf0]  ;;  %v589_v0 = vld [vmem:[#allocation2 + $0x2] ss:$8 sm:$0xf0]  ;;  %v108_v15 = vor.u32 %v107_v10, %v106_v45  ;;  %v89_v16 = vmul.f32 %v88_v61, %v87_v9 }
  0x32   :  { %v591_v14 = vld [vmem:[#allocation2 + $0x3] ss:$8 sm:$0xf0]  ;;  %v593_v17 = vld [vmem:[#allocation2 + $0x4] ss:$8 sm:$0xf0]  ;;  %v257_v30 = vsub.f32 %v549_v28, %v246_v24  ;;  %v247_v32 = vsub.f32 %v246_v24, %v553_v29 }
  0x33   :  { %v595_v3 = vld [vmem:[#allocation2 + $0x5] ss:$8 sm:$0xf0]  ;;  %103 = vst [vmem:[#allocation2 + $0x68] sm:$0xff] %v84_v4  ;;  %104 = vst [vmem:[#allocation2 + $0x70] sm:$0xff] %v86_v13  ;;  %169 = vxpose.xlu0.b32.start [1/16] %v108_v15, 128  ;;  %v252_v25 = vmul.f32 4.0, %v532_v19 }
  0x34   :  { %v597_v1 = vld [vmem:[#allocation2 + $0x6] ss:$8 sm:$0xf0]  ;;  %v599_v18 = vld [vmem:[#allocation2 + $0x7] ss:$8 sm:$0xf0] }
  0x35   :  { %105 = vst [vmem:[#allocation2 + $0x78] sm:$0xff] %v89_v16  ;;  %272 = vst [vmem:[#allocation2 + $0x20] sm:$0xff] %v236_v37  ;;  %v258_v26 = vmul.f32 3.0, %v553_v29  ;;  %v253_v27 = vsub.f32 %v252_v25, %v539_v22  ;;  %v245_v31 = vmul.f32 -0.5900436, %v535_v21 }
  0x36   :  { %273 = vst [vmem:[#allocation2 + $0x28] sm:$0xff] %v237_v62  ;;  %274 = vst [vmem:[#allocation2 + $0x30] sm:$0xff] %v241_v6  ;;  %v249_v33 = vmul.f32 2.8906114, %v543_v23  ;;  %v251_v34 = vmul.f32 -0.4570458, %v535_v21  ;;  %v116_v62 = vor.u32 %v587_v11, %v562_v46 }
  0x37   :  { %275 = vst [vmem:[#allocation2 + $0x38] sm:$0xff] %v242_v8  ;;  %v244_v35 = vmul.f32 0.54627424, %v243_v20  ;;  %v254_v36 = vsub.f32 %v253_v27, %v553_v29  ;;  %v256_v37 = vmul.f32 0.37317634, %v521_v7  ;;  %v259_v19 = vsub.f32 %v257_v30, %v258_v26 }
  0x38   :  { %v284_v38 = vld [vmem:[#allocation2] ss:$8 sm:$0xf]  ;;  %v118_v41 = vld [vmem:[#allocation2 + $0x41] ss:$8 sm:$0xf]  ;;  %v248_v21 = vmul.f32 %v247_v32, %v245_v31  ;;  %v250_v48 = vmul.f32 %v249_v33, %v521_v7  ;;  %v266_v5 = vsub.f32 %v539_v22, %v258_v26  ;;  %v124_v22 = vor.u32 %v589_v0, %v567_v49 }
  0x39   :  { %v110_v39 = vld [vmem:[#allocation2 + $0x40] ss:$8 sm:$0xf]  ;;  %v126_v42 = vld [vmem:[#allocation2 + $0x42] ss:$8 sm:$0xf]  ;;  %v255_v29 = vmul.f32 %v254_v36, %v251_v34  ;;  %v260_v57 = vmul.f32 %v259_v19, %v256_v37  ;;  %v132_v26 = vor.u32 %v591_v14, %v569_v50  ;;  %v140_v33 = vor.u32 %v593_v17, %v574_v55 }
  0x3a   :  { %v134_v28 = vld [vmem:[#allocation2 + $0x43] ss:$8 sm:$0xf]  ;;  %v614_v43 = vld [vmem:[#allocation2 + $0x44] ss:$8 sm:$0xf] }
  0x3b   :  { %v616_v44 = vld [vmem:[#allocation2 + $0x45] ss:$8 sm:$0xf]  ;;  %v621_v61 = vld [vmem:[#allocation2 + $0x46] ss:$8 sm:$0xf] }
  0x3c   :  { %v111_v40 = vld [vmem:[#allocation2 + $0x40] ss:$8 sm:$0xf0]  ;;  %v119_v23 = vld [vmem:[#allocation2 + $0x41] ss:$8 sm:$0xf0] }
  0x3d   :  { %v127_v47 = vld [vmem:[#allocation2 + $0x42] ss:$8 sm:$0xf0]  ;;  %v112_v51 = vor.u32 %v111_v40, %v110_v39  ;;  %v135_v53 = vld [vmem:[#allocation2 + $0x43] ss:$8 sm:$0xf0]  ;;  %v120_v11 = vor.u32 %v119_v23, %v118_v41 }
  0x3e   :  { %v285_v45 = vld [vmem:[#allocation2] ss:$8 sm:$0xf0]  ;;  %v143_v54 = vld [vmem:[#allocation2 + $0x44] ss:$8 sm:$0xf0]  ;;  %v128_v16 = vor.u32 %v127_v47, %v126_v42  ;;  %v136_v31 = vor.u32 %v135_v53, %v134_v28 }
  0x3f   :  { %v286_v52 = vor.u32 %v285_v45, %v284_v38  ;;  %v619_v60 = vld [vmem:[#allocation2 + $0x45] ss:$8 sm:$0xf0]  ;;  %170 = vxpose.xlu0.b32.cont [2/16] %v112_v51, 128  ;;  %v625_v63 = vld [vmem:[#allocation2 + $0x46] ss:$8 sm:$0xf0]  ;;  %v144_v50 = vor.u32 %v143_v54, %v614_v43  ;;  %v148_v38 = vor.u32 %v595_v3, %v576_v56  ;;  %v156_v43 = vor.u32 %v597_v1, %v578_v58 }
  0x40   :  { %v627_v2 = vld [vmem:[#allocation2 + $0x47] ss:$8 sm:$0xf]  ;;  %v261_v8 = vmul.f32 -0.4570458, %v527_v12  ;;  %v152_v55 = vor.u32 %v619_v60, %v616_v44  ;;  %v160_v3 = vor.u32 %v625_v63, %v621_v61 }
  0x41   :  { %332 = vxpose.xlu1.b32.start [1/16] %v286_v52, 128  ;;  %v630_v6 = vld [vmem:[#allocation2 + $0x47] ss:$8 sm:$0xf0]  ;;  %276 = vst [vmem:[#allocation2 + $0x40] sm:$0xff] %v244_v35  ;;  %277 = vst [vmem:[#allocation2 + $0x48] sm:$0xff] %v248_v21 }
  0x42   :  { %278 = vst [vmem:[#allocation2 + $0x50] sm:$0xff] %v250_v48  ;;  %279 = vst [vmem:[#allocation2 + $0x58] sm:$0xff] %v255_v29  ;;  %v263_v9 = vmul.f32 1.4453057, %v521_v7  ;;  %v265_v10 = vmul.f32 -0.5900436, %v527_v12  ;;  %v262_v46 = vmul.f32 %v261_v8, %v254_v36  ;;  %v164_v48 = vor.u32 %v599_v18, %v580_v59 }
  0x43   :  { %280 = vst [vmem:[#allocation2 + $0x60] sm:$0xff] %v260_v57  ;;  %171 = vxpose.xlu0.b32.cont [3/16] %v116_v62, 128  ;;  %v290_v24 = vld [vmem:[#allocation2 + $0x1] ss:$8 sm:$0xf]  ;;  %v168_v1 = vor.u32 %v630_v6, %v627_v2 }
  0x44   :  { %v264_v4 = vmul.f32 %v263_v9, %v243_v20  ;;  %v267_v13 = vmul.f32 %v266_v5, %v265_v10  ;;  %281 = vst [vmem:[#allocation2 + $0x68] sm:$0xff] %v262_v46  ;;  %v291_v25 = vld [vmem:[#allocation2 + $0x1] ss:$8 sm:$0xf0] }
  0x45   :  { %v292_v20 = vor.u32 %v291_v25, %v290_v24  ;;  %v296_v49 = vld [vmem:[#allocation2 + $0x2] ss:$8 sm:$0xf]  ;;  %v302_v37 = vld [vmem:[#allocation2 + $0x3] ss:$8 sm:$0xf] }
  0x46   :  { %282 = vst [vmem:[#allocation2 + $0x70] sm:$0xff] %v264_v4  ;;  %283 = vst [vmem:[#allocation2 + $0x78] sm:$0xff] %v267_v13  ;;  %v297_v0 = vld [vmem:[#allocation2 + $0x2] ss:$8 sm:$0xf0] }
  0x47   :  { %172 = vxpose.xlu0.b32.cont [4/16] %v120_v11, 128  ;;  %v298_v34 = vor.u32 %v297_v0, %v296_v49  ;;  %v303_v19 = vld [vmem:[#allocation2 + $0x3] ss:$8 sm:$0xf0]  ;;  %v308_v42 = vld [vmem:[#allocation2 + $0x4] ss:$8 sm:$0xf] }
  0x48   :  { %v304_v39 = vor.u32 %v303_v19, %v302_v37  ;;  %v309_v28 = vld [vmem:[#allocation2 + $0x4] ss:$8 sm:$0xf0]  ;;  %v314_v21 = vld [vmem:[#allocation2 + $0x5] ss:$8 sm:$0xf] }
  0x49   :  { %v287_v15 = vld [vmem:[#allocation2 + $0x40] ss:$8 sm:$0xf]  ;;  %v293_v27 = vld [vmem:[#allocation2 + $0x41] ss:$8 sm:$0xf]  ;;  %v310_v45 = vor.u32 %v309_v28, %v308_v42 }
  0x4a   :  { %v299_v35 = vld [vmem:[#allocation2 + $0x42] ss:$8 sm:$0xf]  ;;  %v305_v40 = vld [vmem:[#allocation2 + $0x43] ss:$8 sm:$0xf] }
  0x4b   :  { %173 = vxpose.xlu0.b32.cont [5/16] %v124_v22, 128  ;;  %v311_v23 = vld [vmem:[#allocation2 + $0x44] ss:$8 sm:$0xf]  ;;  %v315_v44 = vld [vmem:[#allocation2 + $0x5] ss:$8 sm:$0xf0] }
  0x4c   :  { %v316_v29 = vor.u32 %v315_v44, %v314_v21  ;;  %v317_v51 = vld [vmem:[#allocation2 + $0x45] ss:$8 sm:$0xf]  ;;  %v320_v53 = vld [vmem:[#allocation2 + $0x6] ss:$8 sm:$0xf] }
  0x4d   :  { %v288_v7 = vld [vmem:[#allocation2 + $0x40] ss:$8 sm:$0xf0]  ;;  %v294_v30 = vld [vmem:[#allocation2 + $0x41] ss:$8 sm:$0xf0] }
  0x4e   :  { %v289_v12 = vor.u32 %v288_v7, %v287_v15  ;;  %v295_v32 = vor.u32 %v294_v30, %v293_v27  ;;  %v300_v36 = vld [vmem:[#allocation2 + $0x42] ss:$8 sm:$0xf0]  ;;  %v306_v41 = vld [vmem:[#allocation2 + $0x43] ss:$8 sm:$0xf0] }
  0x4f   :  { %174 = vxpose.xlu0.b32.cont [6/16] %v128_v16, 128  ;;  %v301_v14 = vor.u32 %v300_v36, %v299_v35  ;;  %v307_v17 = vor.u32 %v306_v41, %v305_v40  ;;  %v312_v56 = vld [vmem:[#allocation2 + $0x44] ss:$8 sm:$0xf0]  ;;  %v318_v58 = vld [vmem:[#allocation2 + $0x45] ss:$8 sm:$0xf0] }
  0x50   :  { %333 = vxpose.xlu1.b32.cont [2/16] %v289_v12, 128  ;;  %v313_v47 = vor.u32 %v312_v56, %v311_v23  ;;  %v319_v52 = vor.u32 %v318_v58, %v317_v51  ;;  %v321_v54 = vld [vmem:[#allocation2 + $0x6] ss:$8 sm:$0xf0]  ;;  %v326_v59 = vld [vmem:[#allocation2 + $0x7] ss:$8 sm:$0xf] }
  0x51   :  { %v322_v57 = vor.u32 %v321_v54, %v320_v53  ;;  %v323_v60 = vld [vmem:[#allocation2 + $0x46] ss:$8 sm:$0xf]  ;;  %v327_v18 = vld [vmem:[#allocation2 + $0x7] ss:$8 sm:$0xf0] }
  0x52   :  { %v324_v61 = vld [vmem:[#allocation2 + $0x46] ss:$8 sm:$0xf0]  ;;  %v328_v63 = vor.u32 %v327_v18, %v326_v59  ;;  %v329_v5 = vld [vmem:[#allocation2 + $0x47] ss:$8 sm:$0xf] }
  0x53   :  { %175 = vxpose.xlu0.b32.cont [7/16] %v132_v26, 128  ;;  %v325_v62 = vor.u32 %v324_v61, %v323_v60  ;;  %v330_v8 = vld [vmem:[#allocation2 + $0x47] ss:$8 sm:$0xf0] }
  0x54   :  { %334 = vxpose.xlu1.b32.cont [3/16] %v292_v20, 128  ;;  %v331_v9 = vor.u32 %v330_v8, %v329_v5 }
  0x57   :  { %176 = vxpose.xlu0.b32.cont [8/16] %v136_v31, 128 }
  0x58   :  { %335 = vxpose.xlu1.b32.cont [4/16] %v295_v32, 128 }
  0x5b   :  { %177 = vxpose.xlu0.b32.cont [9/16] %v140_v33, 128 }
  0x5c   :  { %336 = vxpose.xlu1.b32.cont [5/16] %v298_v34, 128 }
  0x5f   :  { %178 = vxpose.xlu0.b32.cont [10/16] %v144_v50, 128 }
  0x60   :  { %337 = vxpose.xlu1.b32.cont [6/16] %v301_v14, 128 }
  0x63   :  { %179 = vxpose.xlu0.b32.cont [11/16] %v148_v38, 128 }
  0x64   :  { %338 = vxpose.xlu1.b32.cont [7/16] %v304_v39, 128 }
  0x67   :  { %180 = vxpose.xlu0.b32.cont [12/16] %v152_v55, 128 }
  0x68   :  { %339 = vxpose.xlu1.b32.cont [8/16] %v307_v17, 128 }
  0x6b   :  { %181 = vxpose.xlu0.b32.cont [13/16] %v156_v43, 128 }
  0x6c   :  { %340 = vxpose.xlu1.b32.cont [9/16] %v310_v45, 128 }
  0x6f   :  { %182 = vxpose.xlu0.b32.cont [14/16] %v160_v3, 128 }
  0x70   :  { %341 = vxpose.xlu1.b32.cont [10/16] %v313_v47, 128 }
  0x73   :  { %183 = vxpose.xlu0.b32.cont [15/16] %v164_v48, 128 }
  0x74   :  { %342 = vxpose.xlu1.b32.cont [11/16] %v316_v29, 128 }
  0x77   :  { %184 = vxpose.xlu0.b32.end [16/16] %v168_v1, 128 }
  0x78   :  { %343 = vxpose.xlu1.b32.cont [12/16] %v319_v52, 128 }
  0x7c   :  { %344 = vxpose.xlu1.b32.cont [13/16] %v322_v57, 128 }
  0x80   :  { %345 = vxpose.xlu1.b32.cont [14/16] %v325_v62, 128 }
  0x84   :  { %346 = vxpose.xlu1.b32.cont [15/16] %v328_v63, 128 }
  0x88   :  { %347 = vxpose.xlu1.b32.end [16/16] %v331_v9, 128 }
  0xb7   :  { %v185_v2 = vpop.trf.xlu0 }
  0xb8   :  { %201 = vst [vmem:[#allocation8] sm:$0xff] %v185_v2 }
  0xbb   :  { %v186_v6 = vpop.trf.xlu0 }
  0xbc   :  { %202 = vst [vmem:[#allocation8 + $0x8] sm:$0xff] %v186_v6 }
  0xbf   :  { %v187_v10 = vpop.trf.xlu0 }
  0xc0   :  { %203 = vst [vmem:[#allocation8 + $0x10] sm:$0xff] %v187_v10 }
  0xc3   :  { %v188_v46 = vpop.trf.xlu0 }
  0xc4   :  { %204 = vst [vmem:[#allocation8 + $0x18] sm:$0xff] %v188_v46 }
  0xc7   :  { %v189_v11 = vpop.trf.xlu0 }
  0xc8   :  { %v348_v4 = vpop.trf.xlu1  ;;  %205 = vst [vmem:[#allocation8 + $0x20] sm:$0xff] %v189_v11 }
  0xc9   :  { %365 = vst [vmem:[#allocation8 + $0x80] sm:$0xff] %v348_v4 }
  0xcb   :  { %v190_v13 = vpop.trf.xlu0 }
  0xcc   :  { %v349_v22 = vpop.trf.xlu1  ;;  %206 = vst [vmem:[#allocation8 + $0x28] sm:$0xff] %v190_v13 }
  0xcd   :  { %366 = vst [vmem:[#allocation8 + $0x88] sm:$0xff] %v349_v22 }
  0xcf   :  { %v191_v15 = vpop.trf.xlu0 }
  0xd0   :  { %v350_v16 = vpop.trf.xlu1  ;;  %207 = vst [vmem:[#allocation8 + $0x30] sm:$0xff] %v191_v15 }
  0xd1   :  { %367 = vst [vmem:[#allocation8 + $0x90] sm:$0xff] %v350_v16 }
  0xd3   :  { %v192_v24 = vpop.trf.xlu0 }
  0xd4   :  { %v351_v7 = vpop.trf.xlu1  ;;  %208 = vst [vmem:[#allocation8 + $0x38] sm:$0xff] %v192_v24 }
  0xd5   :  { %368 = vst [vmem:[#allocation8 + $0x98] sm:$0xff] %v351_v7 }
  0xd7   :  { %v193_v25 = vpop.trf.xlu0 }
  0xd8   :  { %v352_v12 = vpop.trf.xlu1  ;;  %209 = vst [vmem:[#allocation8 + $0x40] sm:$0xff] %v193_v25 }
  0xd9   :  { %369 = vst [vmem:[#allocation8 + $0xa0] sm:$0xff] %v352_v12 }
  0xdb   :  { %v194_v26 = vpop.trf.xlu0 }
  0xdc   :  { %v353_v20 = vpop.trf.xlu1  ;;  %210 = vst [vmem:[#allocation8 + $0x48] sm:$0xff] %v194_v26 }
  0xdd   :  { %370 = vst [vmem:[#allocation8 + $0xa8] sm:$0xff] %v353_v20 }
  0xdf   :  { %v195_v27 = vpop.trf.xlu0 }
  0xe0   :  { %v354_v30 = vpop.trf.xlu1  ;;  %211 = vst [vmem:[#allocation8 + $0x50] sm:$0xff] %v195_v27 }
  0xe1   :  { %371 = vst [vmem:[#allocation8 + $0xb0] sm:$0xff] %v354_v30 }
  0xe3   :  { %v196_v31 = vpop.trf.xlu0 }
  0xe4   :  { %v355_v32 = vpop.trf.xlu1  ;;  %212 = vst [vmem:[#allocation8 + $0x58] sm:$0xff] %v196_v31 }
  0xe5   :  { %372 = vst [vmem:[#allocation8 + $0xb8] sm:$0xff] %v355_v32 }
  0xe7   :  { %v197_v49 = vpop.trf.xlu0 }
  0xe8   :  { %v356_v0 = vpop.trf.xlu1  ;;  %213 = vst [vmem:[#allocation8 + $0x60] sm:$0xff] %v197_v49 }
  0xe9   :  { %373 = vst [vmem:[#allocation8 + $0xc0] sm:$0xff] %v356_v0 }
  0xeb   :  { %v198_v33 = vpop.trf.xlu0 }
  0xec   :  { %v357_v34 = vpop.trf.xlu1  ;;  %214 = vst [vmem:[#allocation8 + $0x68] sm:$0xff] %v198_v33 }
  0xed   :  { %374 = vst [vmem:[#allocation8 + $0xc8] sm:$0xff] %v357_v34 }
  0xef   :  { %v199_v35 = vpop.trf.xlu0 }
  0xf0   :  { %v358_v36 = vpop.trf.xlu1  ;;  %215 = vst [vmem:[#allocation8 + $0x70] sm:$0xff] %v199_v35 }
  0xf1   :  { %375 = vst [vmem:[#allocation8 + $0xd0] sm:$0xff] %v358_v36 }
  0xf3   :  { %v200_v50 = vpop.trf.xlu0 }
  0xf4   :  { %v359_v14 = vpop.trf.xlu1  ;;  %216 = vst [vmem:[#allocation8 + $0x78] sm:$0xff] %v200_v50 }
  0xf5   :  { %376 = vst [vmem:[#allocation8 + $0xd8] sm:$0xff] %v359_v14 }
  0xf8   :  { %v360_v37 = vpop.trf.xlu1 }
  0xf9   :  { %377 = vst [vmem:[#allocation8 + $0xe0] sm:$0xff] %v360_v37 }
  0xfc   :  { %v361_v19 = vpop.trf.xlu1 }
  0xfd   :  { %378 = vst [vmem:[#allocation8 + $0xe8] sm:$0xff] %v361_v19 }
 0x100   :  { %v362_v38 = vpop.trf.xlu1 }
 0x101   :  { %379 = vst [vmem:[#allocation8 + $0xf0] sm:$0xff] %v362_v38 }
 0x104   :  { %v363_v39 = vpop.trf.xlu1 }
 0x105   :  { %380 = vst [vmem:[#allocation8 + $0xf8] sm:$0xff] %v363_v39 }
 0x106   :  { %462 = shalt.err (!%p459_p0)
}
 0x107   :  { %392 = dma.vmem_to_hbm [thread:$0]  %s387_s1, 4096, %s662_s2, [#allocation5], %s478_s12, %s478_s12, %s479_s13  }
 0x108   :  { %475 = dma.done.wait [#allocation5], 4096  }
 0x109   :  { %476 = vsyncadd [#allocation5], 4294963200 }
 0x10a   :  { %396 = vsyncpa [#allocation4], 1 }
 0x10b   :  { %397 = vsyncpa [#allocation7], 1 }
 0x10c   :  { %398 = vsyncpa [#allocation5], 1 }

// kernel: tpu_custom_call.1
= control target key start
LH: loop header
LB: loop body
LE: loop exit
PB: predicated region body
PF: predicated region fallthrough
CT: control target
= control target key end

     0   :  { %6 = vsyncpa [#allocation3], 0  ;;  %s225_s0 = inlined_call_operand.hbm [shape: f32[3,8,128], index: 0, kind: input, shape index: {}]   ;;  %s226_s1 = inlined_call_operand.hbm [shape: f32[16,8,128], index: 1, kind: output, shape index: {}]  }
   0x1   :  { %7 = vsyncpa [#allocation4], 0  ;;  %s198_s6 = smov [#allocation2]  }
   0x2   :  { %s13_s7 = sshll.u32 %s198_s6, 4  ;;  %s14_s7 = int_to_ptr.vmem [resolvable:$true] %s13_s7 }
   0x3   :  { %s162_s8 = scalar_lea.vmem %s14_s7, 384  ;;  %p167_p1 = scmp.lt.s32.totalorder %s14_s7, %s14_s7 }
   0x4   :  { %p163_p0 = scmp.ne.s32.totalorder %s14_s7, %s162_s8  ;;  %p168_p2 = scmp.lt.s32.totalorder %s162_s8, %s162_s8 }
   0x6   :  { %p169_p3 = por %p168_p2, %p167_p1 }
   0x8   :  { %p170_p4 = pnand %p169_p3, %p163_p0 }
   0xa   :  { %173 = shalt.err (!%p170_p4)
}
   0xb   :  { %s199_s9 = smov 128   ;;  %s200_s10 = smov 8  }
   0xc   :  { %19 = dma.hbm_to_vmem [thread:$0]  %s225_s0, 384, %s14_s7, [#allocation3], %s199_s9, %s199_s9, %s200_s10  }
   0xd   :  { %194 = dma.done.wait [#allocation3], 384  }
   0xe   :  { %195 = vsyncadd [#allocation3], 4294966912  ;;  %v201_v0 = vmov 0.2820948   ;;  %v26_v1 = vld [vmem:[#allocation2 + $0x8] sm:$0xff]  ;;  %v29_v2 = vld [vmem:[#allocation2 + $0x10] sm:$0xff] }
   0xf   :  { %71 = vst [vmem:[#allocation5] sm:$0xff] %v201_v0  ;;  %v23_v3 = vld [vmem:[#allocation2] sm:$0xff]  ;;  %v36_v4 = vmul.f32 -0.48860252, %v26_v1  ;;  %v37_v5 = vmul.f32 0.48860252, %v29_v2  ;;  %v34_v8 = vmul.f32 %v29_v2, %v26_v1  ;;  %v31_v10 = vmul.f32 %v26_v1, %v26_v1 }
  0x10   :  { %v38_v6 = vmul.f32 -0.48860252, %v23_v3  ;;  %v33_v7 = vmul.f32 %v26_v1, %v23_v3  ;;  %v30_v9 = vmul.f32 %v23_v3, %v23_v3  ;;  %v32_v11 = vmul.f32 %v29_v2, %v29_v2  ;;  %s202_s0 = smov [#allocation5]  }
  0x11   :  { %73 = vst [vmem:[#allocation5 + $0x8] sm:$0xff] %v36_v4  ;;  %75 = vst [vmem:[#allocation5 + $0x10] sm:$0xff] %v37_v5  ;;  %v35_v13 = vmul.f32 %v29_v2, %v23_v3  ;;  %v48_v14 = vmul.f32 -0.5900436, %v26_v1  ;;  %v40_v16 = vmul.f32 -1.0925485, %v34_v8 }
  0x12   :  { %78 = vst [vmem:[#allocation5 + $0x18] sm:$0xff] %v38_v6  ;;  %v39_v12 = vmul.f32 1.0925485, %v33_v7  ;;  %v52_v15 = vmul.f32 2.8906114, %v33_v7  ;;  %v41_v17 = vmul.f32 2.0, %v32_v11  ;;  %v46_v18 = vsub.f32 %v30_v9, %v31_v10 }
  0x13   :  { %v49_v19 = vmul.f32 3.0, %v30_v9  ;;  %v45_v20 = vmul.f32 -1.0925485, %v35_v13  ;;  %v54_v22 = vmul.f32 -0.4570458, %v26_v1  ;;  %v55_v23 = vmul.f32 4.0, %v32_v11 }
  0x14   :  { %81 = vst [vmem:[#allocation5 + $0x20] sm:$0xff] %v39_v12  ;;  %v53_v21 = vmul.f32 %v52_v15, %v29_v2  ;;  %84 = vst [vmem:[#allocation5 + $0x28] sm:$0xff] %v40_v16  ;;  %v42_v24 = vsub.f32 %v41_v17, %v30_v9  ;;  %v47_v25 = vmul.f32 0.54627424, %v46_v18  ;;  %v59_v27 = vmul.f32 0.37317634, %v29_v2 }
  0x15   :  { %v50_v26 = vsub.f32 %v49_v19, %v31_v10  ;;  %90 = vst [vmem:[#allocation5 + $0x38] sm:$0xff] %v45_v20  ;;  %v56_v28 = vsub.f32 %v55_v23, %v30_v9  ;;  %v60_v29 = vsub.f32 %v41_v17, %v49_v19  ;;  %v61_v30 = vmul.f32 3.0, %v31_v10  ;;  %s120_s13 = sshll.u32 %s202_s0, 4  ;;  %s121_s13 = int_to_ptr.vmem [resolvable:$true] %s120_s13 }
  0x16   :  { %99 = vst [vmem:[#allocation5 + $0x50] sm:$0xff] %v53_v21  ;;  %v64_v31 = vmul.f32 -0.4570458, %v23_v3  ;;  %v43_v32 = vsub.f32 %v42_v24, %v31_v10  ;;  %93 = vst [vmem:[#allocation5 + $0x40] sm:$0xff] %v47_v25  ;;  %v66_v34 = vmul.f32 1.4453057, %v29_v2  ;;  %p179_p6 = scmp.lt.s32.totalorder %s121_s13, %s121_s13 }
  0x17   :  { %v51_v33 = vmul.f32 %v50_v26, %v48_v14  ;;  %v68_v35 = vmul.f32 -0.5900436, %v23_v3  ;;  %v57_v36 = vsub.f32 %v56_v28, %v31_v10  ;;  %v62_v37 = vsub.f32 %v60_v29, %v61_v30  ;;  %s174_s14 = scalar_lea.vmem %s121_s13, 2048 }
  0x18   :  { %v69_v38 = vsub.f32 %v30_v9, %v61_v30  ;;  %v44_v39 = vmul.f32 0.31539157, %v43_v32  ;;  %v67_v40 = vmul.f32 %v66_v34, %v46_v18  ;;  %p175_p5 = scmp.ne.s32.totalorder %s121_s13, %s174_s14  ;;  %p180_p7 = scmp.lt.s32.totalorder %s174_s14, %s174_s14 }
  0x19   :  { %96 = vst [vmem:[#allocation5 + $0x48] sm:$0xff] %v51_v33  ;;  %v58_v41 = vmul.f32 %v57_v36, %v54_v22  ;;  %v63_v42 = vmul.f32 %v62_v37, %v59_v27  ;;  %v65_v43 = vmul.f32 %v64_v31, %v57_v36 }
  0x1a   :  { %v70_v44 = vmul.f32 %v69_v38, %v68_v35  ;;  %87 = vst [vmem:[#allocation5 + $0x30] sm:$0xff] %v44_v39  ;;  %111 = vst [vmem:[#allocation5 + $0x70] sm:$0xff] %v67_v40  ;;  %p181_p8 = por %p180_p7, %p179_p6 }
  0x1b   :  { %102 = vst [vmem:[#allocation5 + $0x58] sm:$0xff] %v58_v41  ;;  %105 = vst [vmem:[#allocation5 + $0x60] sm:$0xff] %v63_v42 }
  0x1c   :  { %108 = vst [vmem:[#allocation5 + $0x68] sm:$0xff] %v65_v43  ;;  %114 = vst [vmem:[#allocation5 + $0x78] sm:$0xff] %v70_v44  ;;  %p182_p9 = pnand %p181_p8, %p175_p5 }
  0x1e   :  { %185 = shalt.err (!%p182_p9)
}
  0x1f   :  { %126 = dma.vmem_to_hbm [thread:$0]  %s121_s13, 2048, %s226_s1, [#allocation4], %s199_s9, %s199_s9, %s200_s10  }
  0x20   :  { %196 = dma.done.wait [#allocation4], 2048  }
  0x21   :  { %197 = vsyncadd [#allocation4], 4294965248 }
  0x22   :  { %130 = vsyncpa [#allocation3], 1 }
  0x23   :  { %131 = vsyncpa [#allocation4], 1 }

</bundles_post_ra>
